<compile_context>
chip_gen: v7x
topology: tpu7x:2x2x1
jax: 0.10.0
libtpu: 0.0.40
codegen_flags: <defaults>
</compile_context>

<pallas_src>
import functools

import jax
import jax.numpy as jnp
from jax import lax
from jax.experimental import pallas as pl
from jax.experimental.pallas import tpu as pltpu

GEN_EPS = 1e-7    # GENConv message eps
BN_EPS = 1e-5     # BatchNorm1d eps

_VMEM = pl.BlockSpec(memory_space=pltpu.MemorySpace.VMEM)


# ------------------------------ fused kernel ------------------------------

def _shape_encoder_kernel(
    x_ref, src_ref, dst_ref,                                  # inputs / edge list
    w_src_ref, b_src_ref, w_dst_ref, b_dst_ref,               # conv_in lin_src/lin_dst
    cw1_ref, cb1_ref, cs_ref, ct_ref, cw2_ref, cb2_ref,       # conv_in internal MLP
    lw1_ref, lb1_ref, ls_ref, lt_ref, lw2_ref, lb2_ref,       # stacked layer MLPs [L, ...]
    hw1_ref, hb1_ref, hw2_ref, hb2_ref,                       # head MLP
    o_ref,                                                    # [1, out_dim]
    *, num_layers):
    f32 = jnp.float32
    n = x_ref.shape[0]
    e = src_ref.shape[0]

    # ---- densify edge list -> adjacency COUNT matrix on the MXU ----
    # adj[d, s] = #edges (s -> d). Duplicate edges contribute their multiplicity
    # (matches PyG's per-message softmax aggregation). Padded edges carry the
    # sentinel id == n, match no node, and contribute nothing.
    row_iota_ne = lax.broadcasted_iota(jnp.int32, (n, e), 0)          # [N, E]
    onehot_dst_t = (row_iota_ne == dst_ref[...]).astype(f32)          # [N, E]
    col_iota_en = lax.broadcasted_iota(jnp.int32, (e, n), 1)          # [E, N]
    onehot_src = (col_iota_en == src_ref[...]).astype(f32)            # [E, N]
    adj = jnp.dot(onehot_dst_t, onehot_src,
                  preferred_element_type=f32)                         # [N_dst, N_src]

    def gen_aggregate(h_src, x_dst):
        # GENConv softmax aggregation (t = 1) as two MXU matmuls.
        msg = jnp.maximum(h_src, 0.0) + GEN_EPS                       # relu(x_j) + eps
        shift = jnp.max(msg, axis=0, keepdims=True)                   # per-feature shift
        ex = jnp.exp(msg - shift)                                     # [N_src, C]
        denom = jnp.dot(adj, ex, preferred_element_type=f32)          # [N_dst, C]
        num = jnp.dot(adj, ex * msg, preferred_element_type=f32)      # [N_dst, C]
        inv = pl.reciprocal(denom, approx=True)                       # EUP slot
        aggr = jnp.where(denom > 0.0, num * inv, 0.0)                 # isolated nodes -> 0
        return aggr + x_dst                                           # GENConv skip

    def gen_mlp(h, w1, b1, s, t, w2, b2):
        # Linear -> folded eval-mode BatchNorm1d -> ReLU -> Linear
        y = jnp.dot(h, w1, preferred_element_type=f32) + b1
        y = jnp.maximum(y * s + t, 0.0)
        return jnp.dot(y, w2, preferred_element_type=f32) + b2

    # ---- conv_in (in_channels != hidden -> lin_src / lin_dst) + torch.relu ----
    x_in = x_ref[...]
    h_src = jnp.dot(x_in, w_src_ref[...], preferred_element_type=f32) + b_src_ref[...]
    x_dst = jnp.dot(x_in, w_dst_ref[...], preferred_element_type=f32) + b_dst_ref[...]
    x = gen_mlp(gen_aggregate(h_src, x_dst),
                cw1_ref[...], cb1_ref[...], cs_ref[...], ct_ref[...],
                cw2_ref[...], cb2_ref[...])
    x = jnp.maximum(x, 0.0)

    # ---- DeepGCNLayer 'res+' (norm=None, act=relu, eval dropout=identity) ----
    # x = x + GENConv_mlp(aggregate(relu(x), relu(x)))   (residual fused in-kernel)
    for i in range(num_layers):
        xr = jnp.maximum(x, 0.0)
        a = gen_aggregate(xr, xr)
        h = gen_mlp(a, lw1_ref[i], lb1_ref[i], ls_ref[i], lt_ref[i],
                    lw2_ref[i], lb2_ref[i])
        x = x + h

    # ---- global_max_pool (batch=None) + head MLP, fused ----
    g = jnp.max(x, axis=0, keepdims=True)                             # [1, hidden]
    y = jnp.dot(g, hw1_ref[...], preferred_element_type=f32) + hb1_ref[...]
    y = jnp.maximum(y, 0.0)
    o_ref[...] = jnp.dot(y, hw2_ref[...], preferred_element_type=f32) + hb2_ref[...]


# ------------------------------ wrapper ------------------------------

def shape_encoder_forward(params, x, edge_index, num_nodes):
    num_layers = params["lay_w1"].shape[0]
    out_dim = params["head_w2"].shape[1]

    # Pad the edge list to a lane-friendly length with an out-of-range sentinel
    # (== num_nodes) so padded edges contribute nothing inside the kernel.
    e = edge_index.shape[1]
    e_pad = max(128, ((e + 127) // 128) * 128)
    ei = edge_index.astype(jnp.int32)
    if e_pad > e:
        pad = jnp.full((2, e_pad - e), num_nodes, jnp.int32)
        ei = jnp.concatenate([ei, pad], axis=1)
    src_col = ei[0].reshape(e_pad, 1)     # [E, 1] for one-hot vs [E, N] iota
    dst_row = ei[1].reshape(1, e_pad)     # [1, E] for one-hot vs [N, E] iota

    args = (
        x.astype(jnp.float32), src_col, dst_row,
        params["w_src"], params["b_src"], params["w_dst"], params["b_dst"],
        params["cin_w1"], params["cin_b1"], params["cin_bn_scale"], params["cin_bn_shift"],
        params["cin_w2"], params["cin_b2"],
        params["lay_w1"], params["lay_b1"], params["lay_bn_scale"], params["lay_bn_shift"],
        params["lay_w2"], params["lay_b2"],
        params["head_w1"], params["head_b1"], params["head_w2"], params["head_b2"],
    )

    return pl.pallas_call(
        functools.partial(_shape_encoder_kernel, num_layers=num_layers),
        out_shape=jax.ShapeDtypeStruct((1, out_dim), jnp.float32),
        in_specs=[_VMEM] * len(args),
        out_specs=_VMEM,
    )(*args)


# --------------------- parameters (deterministic init) ---------------------

def _init_linear(key, d_in, d_out, scale=0.1):
    kw, kb = jax.random.split(key)
    w = scale * jax.random.normal(kw, (d_in, d_out), jnp.float32)
    b = scale * jax.random.normal(kb, (1, d_out), jnp.float32)
    return w, b


def _init_gen_mlp(key, d, expansion=2):
    k1, k2 = jax.random.split(key)
    hid = d * expansion
    w1, b1 = _init_linear(k1, d, hid)
    w2, b2 = _init_linear(k2, hid, d)
    # eval-mode BatchNorm1d(hid): gamma=1, beta=0, running_mean=0, running_var=1, folded.
    gamma = jnp.ones((1, hid), jnp.float32)
    beta = jnp.zeros((1, hid), jnp.float32)
    run_mean = jnp.zeros((1, hid), jnp.float32)
    run_var = jnp.ones((1, hid), jnp.float32)
    bn_scale = gamma / jnp.sqrt(run_var + BN_EPS)
    bn_shift = beta - run_mean * bn_scale
    return w1, b1, bn_scale, bn_shift, w2, b2


def init_shape_encoder(key, in_channels=6, hidden=64, num_layers=3, out_dim=80):
    keys = jax.random.split(key, num_layers + 5)
    p = {}
    p["w_src"], p["b_src"] = _init_linear(keys[0], in_channels, hidden)
    p["w_dst"], p["b_dst"] = _init_linear(keys[1], in_channels, hidden)
    (p["cin_w1"], p["cin_b1"], p["cin_bn_scale"], p["cin_bn_shift"],
     p["cin_w2"], p["cin_b2"]) = _init_gen_mlp(keys[2], hidden)
    lay = [_init_gen_mlp(keys[3 + i], hidden) for i in range(num_layers)]
    p["lay_w1"] = jnp.stack([l[0] for l in lay])
    p["lay_b1"] = jnp.stack([l[1] for l in lay])
    p["lay_bn_scale"] = jnp.stack([l[2] for l in lay])
    p["lay_bn_shift"] = jnp.stack([l[3] for l in lay])
    p["lay_w2"] = jnp.stack([l[4] for l in lay])
    p["lay_b2"] = jnp.stack([l[5] for l in lay])
    p["head_w1"], p["head_b1"] = _init_linear(keys[3 + num_layers], hidden, hidden)
    p["head_w2"], p["head_b2"] = _init_linear(keys[4 + num_layers], hidden, out_dim)
    return p


# ----------------------------------- main -----------------------------------

if __name__ == "__main__":
    key = jax.random.PRNGKey(0)
    k_params, k_x = jax.random.split(key)

    N_NODES = 16
    IN_CHANNELS = 6

    params = init_shape_encoder(k_params, in_channels=IN_CHANNELS, hidden=64,
                                num_layers=3, out_dim=80)

    # deterministic node features
    x = jax.random.normal(k_x, (N_NODES, IN_CHANNELS), jnp.float32)

    # deterministic edge_index [2, E]: bidirectional ring + jumps of 4  (E = 48)
    idx = jnp.arange(N_NODES, dtype=jnp.int32)
    src = jnp.concatenate([idx, (idx + 1) % N_NODES, idx])
    dst = jnp.concatenate([(idx + 1) % N_NODES, idx, (idx + 4) % N_NODES])
    edge_index = jnp.stack([src, dst], axis=0)

    forward = jax.jit(shape_encoder_forward, static_argnums=(3,))
    out = forward(params, x, edge_index, N_NODES)
    out = jax.block_until_ready(out)

    assert out.shape == (1, 80), out.shape
    assert bool(jnp.all(jnp.isfinite(out)))
    print("KERNEL_OK")
</pallas_src>

<mosaic_0001>
module attributes {stable_mosaic.version = 11 : i64} {
  func.func @_shape_encoder_kernel(%arg0: memref<16x6xf32, #tpu.memory_space<vmem>>, %arg1: memref<128x1xi32, #tpu.memory_space<vmem>>, %arg2: memref<1x128xi32, #tpu.memory_space<vmem>>, %arg3: memref<6x64xf32, #tpu.memory_space<vmem>>, %arg4: memref<1x64xf32, #tpu.memory_space<vmem>>, %arg5: memref<6x64xf32, #tpu.memory_space<vmem>>, %arg6: memref<1x64xf32, #tpu.memory_space<vmem>>, %arg7: memref<64x128xf32, #tpu.memory_space<vmem>>, %arg8: memref<1x128xf32, #tpu.memory_space<vmem>>, %arg9: memref<1x128xf32, #tpu.memory_space<vmem>>, %arg10: memref<1x128xf32, #tpu.memory_space<vmem>>, %arg11: memref<128x64xf32, #tpu.memory_space<vmem>>, %arg12: memref<1x64xf32, #tpu.memory_space<vmem>>, %arg13: memref<3x64x128xf32, #tpu.memory_space<vmem>>, %arg14: memref<3x1x128xf32, #tpu.memory_space<vmem>>, %arg15: memref<3x1x128xf32, #tpu.memory_space<vmem>>, %arg16: memref<3x1x128xf32, #tpu.memory_space<vmem>>, %arg17: memref<3x128x64xf32, #tpu.memory_space<vmem>>, %arg18: memref<3x1x64xf32, #tpu.memory_space<vmem>>, %arg19: memref<64x64xf32, #tpu.memory_space<vmem>>, %arg20: memref<1x64xf32, #tpu.memory_space<vmem>>, %arg21: memref<64x80xf32, #tpu.memory_space<vmem>>, %arg22: memref<1x80xf32, #tpu.memory_space<vmem>>, %arg23: memref<1x80xf32, #tpu.memory_space<vmem>>) attributes {dimension_semantics = [], scalar_prefetch = 0 : i64, scratch_operands = 0 : i64, tpu.core_type = #tpu.core_type<tc>} {
    %0 = tpu.iota {dimensions = array<i32: 0>} : vector<16x128xi32>
    %c0 = arith.constant 0 : index
    %c0_0 = arith.constant 0 : index
    %1 = vector.load %arg2[%c0, %c0_0] : memref<1x128xi32, #tpu.memory_space<vmem>>, vector<1x128xi32>
    %2 = vector.broadcast %1 : vector<1x128xi32> to vector<16x128xi32>
    %3 = arith.cmpi eq, %0, %2 : vector<16x128xi32>
    %4 = arith.extui %3 : vector<16x128xi1> to vector<16x128xi32>
    %5 = arith.sitofp %4 : vector<16x128xi32> to vector<16x128xf32>
    %6 = tpu.iota {dimensions = array<i32: 1>} : vector<128x16xi32>
    %c0_1 = arith.constant 0 : index
    %c0_2 = arith.constant 0 : index
    %7 = vector.load %arg1[%c0_1, %c0_2] : memref<128x1xi32, #tpu.memory_space<vmem>>, vector<128x1xi32>
    %8 = vector.broadcast %7 : vector<128x1xi32> to vector<128x16xi32>
    %9 = arith.cmpi eq, %6, %8 : vector<128x16xi32>
    %10 = arith.extui %9 : vector<128x16xi1> to vector<128x16xi32>
    %11 = arith.sitofp %10 : vector<128x16xi32> to vector<128x16xf32>
    %cst = arith.constant dense<0.000000e+00> : vector<16x16xf32>
    %12 = tpu.matmul %5, %11, %cst {dimension_numbers = #tpu.dot_dimension_numbers<[1], [0], [0], [1], [0, 0, 1, 1], [], []>} : vector<16x128xf32>, vector<128x16xf32>, vector<16x16xf32> -> vector<16x16xf32>
    %c0_3 = arith.constant 0 : index
    %c0_4 = arith.constant 0 : index
    %13 = vector.load %arg0[%c0_3, %c0_4] : memref<16x6xf32, #tpu.memory_space<vmem>>, vector<16x6xf32>
    %c0_5 = arith.constant 0 : index
    %c0_6 = arith.constant 0 : index
    %14 = vector.load %arg3[%c0_5, %c0_6] : memref<6x64xf32, #tpu.memory_space<vmem>>, vector<6x64xf32>
    %cst_7 = arith.constant dense<0.000000e+00> : vector<16x64xf32>
    %15 = tpu.matmul %13, %14, %cst_7 {dimension_numbers = #tpu.dot_dimension_numbers<[1], [0], [0], [1], [0, 0, 1, 1], [], []>} : vector<16x6xf32>, vector<6x64xf32>, vector<16x64xf32> -> vector<16x64xf32>
    %c0_8 = arith.constant 0 : index
    %c0_9 = arith.constant 0 : index
    %16 = vector.load %arg4[%c0_8, %c0_9] : memref<1x64xf32, #tpu.memory_space<vmem>>, vector<1x64xf32>
    %17 = vector.broadcast %16 : vector<1x64xf32> to vector<16x64xf32>
    %18 = arith.addf %15, %17 : vector<16x64xf32>
    %c0_10 = arith.constant 0 : index
    %c0_11 = arith.constant 0 : index
    %19 = vector.load %arg5[%c0_10, %c0_11] : memref<6x64xf32, #tpu.memory_space<vmem>>, vector<6x64xf32>
    %cst_12 = arith.constant dense<0.000000e+00> : vector<16x64xf32>
    %20 = tpu.matmul %13, %19, %cst_12 {dimension_numbers = #tpu.dot_dimension_numbers<[1], [0], [0], [1], [0, 0, 1, 1], [], []>} : vector<16x6xf32>, vector<6x64xf32>, vector<16x64xf32> -> vector<16x64xf32>
    %c0_13 = arith.constant 0 : index
    %c0_14 = arith.constant 0 : index
    %21 = vector.load %arg6[%c0_13, %c0_14] : memref<1x64xf32, #tpu.memory_space<vmem>>, vector<1x64xf32>
    %22 = vector.broadcast %21 : vector<1x64xf32> to vector<16x64xf32>
    %23 = arith.addf %20, %22 : vector<16x64xf32>
    %cst_15 = arith.constant 0.000000e+00 : f32
    %24 = vector.broadcast %cst_15 : f32 to vector<16x64xf32>
    %25 = arith.maximumf %18, %24 : vector<16x64xf32>
    %cst_16 = arith.constant 1.000000e-07 : f32
    %26 = vector.broadcast %cst_16 : f32 to vector<16x64xf32>
    %27 = arith.addf %25, %26 : vector<16x64xf32>
    %cst_17 = arith.constant dense<0xFF800000> : vector<64xf32>
    %28 = vector.multi_reduction <maximumf>, %27, %cst_17 [0] : vector<16x64xf32> to vector<64xf32>
    %29 = vector.shape_cast %28 : vector<64xf32> to vector<1x64xf32>
    %30 = vector.broadcast %29 : vector<1x64xf32> to vector<16x64xf32>
    %31 = arith.subf %27, %30 : vector<16x64xf32>
    %32 = math.exp %31 : vector<16x64xf32>
    %cst_18 = arith.constant dense<0.000000e+00> : vector<16x64xf32>
    %33 = tpu.matmul %12, %32, %cst_18 {dimension_numbers = #tpu.dot_dimension_numbers<[1], [0], [0], [1], [0, 0, 1, 1], [], []>} : vector<16x16xf32>, vector<16x64xf32>, vector<16x64xf32> -> vector<16x64xf32>
    %34 = arith.mulf %32, %27 : vector<16x64xf32>
    %cst_19 = arith.constant dense<0.000000e+00> : vector<16x64xf32>
    %35 = tpu.matmul %12, %34, %cst_19 {dimension_numbers = #tpu.dot_dimension_numbers<[1], [0], [0], [1], [0, 0, 1, 1], [], []>} : vector<16x16xf32>, vector<16x64xf32>, vector<16x64xf32> -> vector<16x64xf32>
    %36 = tpu.reciprocal %33 {approx = true} : vector<16x64xf32> -> vector<16x64xf32>
    %cst_20 = arith.constant 0.000000e+00 : f32
    %37 = vector.broadcast %cst_20 : f32 to vector<16x64xf32>
    %38 = arith.cmpf ogt, %33, %37 : vector<16x64xf32>
    %39 = arith.mulf %35, %36 : vector<16x64xf32>
    %cst_21 = arith.constant 0.000000e+00 : f32
    %40 = vector.broadcast %cst_21 : f32 to vector<16x64xf32>
    %41 = arith.select %38, %39, %40 : vector<16x64xi1>, vector<16x64xf32>
    %42 = arith.addf %41, %23 : vector<16x64xf32>
    %c0_22 = arith.constant 0 : index
    %c0_23 = arith.constant 0 : index
    %43 = vector.load %arg7[%c0_22, %c0_23] : memref<64x128xf32, #tpu.memory_space<vmem>>, vector<64x128xf32>
    %c0_24 = arith.constant 0 : index
    %c0_25 = arith.constant 0 : index
    %44 = vector.load %arg8[%c0_24, %c0_25] : memref<1x128xf32, #tpu.memory_space<vmem>>, vector<1x128xf32>
    %c0_26 = arith.constant 0 : index
    %c0_27 = arith.constant 0 : index
    %45 = vector.load %arg9[%c0_26, %c0_27] : memref<1x128xf32, #tpu.memory_space<vmem>>, vector<1x128xf32>
    %c0_28 = arith.constant 0 : index
    %c0_29 = arith.constant 0 : index
    %46 = vector.load %arg10[%c0_28, %c0_29] : memref<1x128xf32, #tpu.memory_space<vmem>>, vector<1x128xf32>
    %c0_30 = arith.constant 0 : index
    %c0_31 = arith.constant 0 : index
    %47 = vector.load %arg11[%c0_30, %c0_31] : memref<128x64xf32, #tpu.memory_space<vmem>>, vector<128x64xf32>
    %c0_32 = arith.constant 0 : index
    %c0_33 = arith.constant 0 : index
    %48 = vector.load %arg12[%c0_32, %c0_33] : memref<1x64xf32, #tpu.memory_space<vmem>>, vector<1x64xf32>
    %cst_34 = arith.constant dense<0.000000e+00> : vector<16x128xf32>
    %49 = tpu.matmul %42, %43, %cst_34 {dimension_numbers = #tpu.dot_dimension_numbers<[1], [0], [0], [1], [0, 0, 1, 1], [], []>} : vector<16x64xf32>, vector<64x128xf32>, vector<16x128xf32> -> vector<16x128xf32>
    %50 = vector.broadcast %44 : vector<1x128xf32> to vector<16x128xf32>
    %51 = arith.addf %49, %50 : vector<16x128xf32>
    %52 = vector.broadcast %45 : vector<1x128xf32> to vector<16x128xf32>
    %53 = arith.mulf %51, %52 : vector<16x128xf32>
    %54 = vector.broadcast %46 : vector<1x128xf32> to vector<16x128xf32>
    %55 = arith.addf %53, %54 : vector<16x128xf32>
    %cst_35 = arith.constant 0.000000e+00 : f32
    %56 = vector.broadcast %cst_35 : f32 to vector<16x128xf32>
    %57 = arith.maximumf %55, %56 : vector<16x128xf32>
    %cst_36 = arith.constant dense<0.000000e+00> : vector<16x64xf32>
    %58 = tpu.matmul %57, %47, %cst_36 {dimension_numbers = #tpu.dot_dimension_numbers<[1], [0], [0], [1], [0, 0, 1, 1], [], []>} : vector<16x128xf32>, vector<128x64xf32>, vector<16x64xf32> -> vector<16x64xf32>
    %59 = vector.broadcast %48 : vector<1x64xf32> to vector<16x64xf32>
    %60 = arith.addf %58, %59 : vector<16x64xf32>
    %cst_37 = arith.constant 0.000000e+00 : f32
    %61 = vector.broadcast %cst_37 : f32 to vector<16x64xf32>
    %62 = arith.maximumf %60, %61 : vector<16x64xf32>
    %cst_38 = arith.constant 0.000000e+00 : f32
    %63 = vector.broadcast %cst_38 : f32 to vector<16x64xf32>
    %64 = arith.maximumf %62, %63 : vector<16x64xf32>
    %cst_39 = arith.constant 0.000000e+00 : f32
    %65 = vector.broadcast %cst_39 : f32 to vector<16x64xf32>
    %66 = arith.maximumf %64, %65 : vector<16x64xf32>
    %cst_40 = arith.constant 1.000000e-07 : f32
    %67 = vector.broadcast %cst_40 : f32 to vector<16x64xf32>
    %68 = arith.addf %66, %67 : vector<16x64xf32>
    %cst_41 = arith.constant dense<0xFF800000> : vector<64xf32>
    %69 = vector.multi_reduction <maximumf>, %68, %cst_41 [0] : vector<16x64xf32> to vector<64xf32>
    %70 = vector.shape_cast %69 : vector<64xf32> to vector<1x64xf32>
    %71 = vector.broadcast %70 : vector<1x64xf32> to vector<16x64xf32>
    %72 = arith.subf %68, %71 : vector<16x64xf32>
    %73 = math.exp %72 : vector<16x64xf32>
    %cst_42 = arith.constant dense<0.000000e+00> : vector<16x64xf32>
    %74 = tpu.matmul %12, %73, %cst_42 {dimension_numbers = #tpu.dot_dimension_numbers<[1], [0], [0], [1], [0, 0, 1, 1], [], []>} : vector<16x16xf32>, vector<16x64xf32>, vector<16x64xf32> -> vector<16x64xf32>
    %75 = arith.mulf %73, %68 : vector<16x64xf32>
    %cst_43 = arith.constant dense<0.000000e+00> : vector<16x64xf32>
    %76 = tpu.matmul %12, %75, %cst_43 {dimension_numbers = #tpu.dot_dimension_numbers<[1], [0], [0], [1], [0, 0, 1, 1], [], []>} : vector<16x16xf32>, vector<16x64xf32>, vector<16x64xf32> -> vector<16x64xf32>
    %77 = tpu.reciprocal %74 {approx = true} : vector<16x64xf32> -> vector<16x64xf32>
    %cst_44 = arith.constant 0.000000e+00 : f32
    %78 = vector.broadcast %cst_44 : f32 to vector<16x64xf32>
    %79 = arith.cmpf ogt, %74, %78 : vector<16x64xf32>
    %80 = arith.mulf %76, %77 : vector<16x64xf32>
    %cst_45 = arith.constant 0.000000e+00 : f32
    %81 = vector.broadcast %cst_45 : f32 to vector<16x64xf32>
    %82 = arith.select %79, %80, %81 : vector<16x64xi1>, vector<16x64xf32>
    %83 = arith.addf %82, %64 : vector<16x64xf32>
    %c0_46 = arith.constant 0 : index
    %c0_47 = arith.constant 0 : index
    %c0_48 = arith.constant 0 : index
    %84 = vector.load %arg13[%c0_46, %c0_47, %c0_48] : memref<3x64x128xf32, #tpu.memory_space<vmem>>, vector<1x64x128xf32>
    %85 = vector.shape_cast %84 : vector<1x64x128xf32> to vector<64x128xf32>
    %c0_49 = arith.constant 0 : index
    %c0_50 = arith.constant 0 : index
    %c0_51 = arith.constant 0 : index
    %86 = vector.load %arg14[%c0_49, %c0_50, %c0_51] : memref<3x1x128xf32, #tpu.memory_space<vmem>>, vector<1x1x128xf32>
    %87 = vector.shape_cast %86 : vector<1x1x128xf32> to vector<1x128xf32>
    %c0_52 = arith.constant 0 : index
    %c0_53 = arith.constant 0 : index
    %c0_54 = arith.constant 0 : index
    %88 = vector.load %arg15[%c0_52, %c0_53, %c0_54] : memref<3x1x128xf32, #tpu.memory_space<vmem>>, vector<1x1x128xf32>
    %89 = vector.shape_cast %88 : vector<1x1x128xf32> to vector<1x128xf32>
    %c0_55 = arith.constant 0 : index
    %c0_56 = arith.constant 0 : index
    %c0_57 = arith.constant 0 : index
    %90 = vector.load %arg16[%c0_55, %c0_56, %c0_57] : memref<3x1x128xf32, #tpu.memory_space<vmem>>, vector<1x1x128xf32>
    %91 = vector.shape_cast %90 : vector<1x1x128xf32> to vector<1x128xf32>
    %c0_58 = arith.constant 0 : index
    %c0_59 = arith.constant 0 : index
    %c0_60 = arith.constant 0 : index
    %92 = vector.load %arg17[%c0_58, %c0_59, %c0_60] : memref<3x128x64xf32, #tpu.memory_space<vmem>>, vector<1x128x64xf32>
    %93 = vector.shape_cast %92 : vector<1x128x64xf32> to vector<128x64xf32>
    %c0_61 = arith.constant 0 : index
    %c0_62 = arith.constant 0 : index
    %c0_63 = arith.constant 0 : index
    %94 = vector.load %arg18[%c0_61, %c0_62, %c0_63] : memref<3x1x64xf32, #tpu.memory_space<vmem>>, vector<1x1x64xf32>
    %95 = vector.shape_cast %94 : vector<1x1x64xf32> to vector<1x64xf32>
    %cst_64 = arith.constant dense<0.000000e+00> : vector<16x128xf32>
    %96 = tpu.matmul %83, %85, %cst_64 {dimension_numbers = #tpu.dot_dimension_numbers<[1], [0], [0], [1], [0, 0, 1, 1], [], []>} : vector<16x64xf32>, vector<64x128xf32>, vector<16x128xf32> -> vector<16x128xf32>
    %97 = vector.broadcast %87 : vector<1x128xf32> to vector<16x128xf32>
    %98 = arith.addf %96, %97 : vector<16x128xf32>
    %99 = vector.broadcast %89 : vector<1x128xf32> to vector<16x128xf32>
    %100 = arith.mulf %98, %99 : vector<16x128xf32>
    %101 = vector.broadcast %91 : vector<1x128xf32> to vector<16x128xf32>
    %102 = arith.addf %100, %101 : vector<16x128xf32>
    %cst_65 = arith.constant 0.000000e+00 : f32
    %103 = vector.broadcast %cst_65 : f32 to vector<16x128xf32>
    %104 = arith.maximumf %102, %103 : vector<16x128xf32>
    %cst_66 = arith.constant dense<0.000000e+00> : vector<16x64xf32>
    %105 = tpu.matmul %104, %93, %cst_66 {dimension_numbers = #tpu.dot_dimension_numbers<[1], [0], [0], [1], [0, 0, 1, 1], [], []>} : vector<16x128xf32>, vector<128x64xf32>, vector<16x64xf32> -> vector<16x64xf32>
    %106 = vector.broadcast %95 : vector<1x64xf32> to vector<16x64xf32>
    %107 = arith.addf %105, %106 : vector<16x64xf32>
    %108 = arith.addf %62, %107 : vector<16x64xf32>
    %cst_67 = arith.constant 0.000000e+00 : f32
    %109 = vector.broadcast %cst_67 : f32 to vector<16x64xf32>
    %110 = arith.maximumf %108, %109 : vector<16x64xf32>
    %cst_68 = arith.constant 0.000000e+00 : f32
    %111 = vector.broadcast %cst_68 : f32 to vector<16x64xf32>
    %112 = arith.maximumf %110, %111 : vector<16x64xf32>
    %cst_69 = arith.constant 1.000000e-07 : f32
    %113 = vector.broadcast %cst_69 : f32 to vector<16x64xf32>
    %114 = arith.addf %112, %113 : vector<16x64xf32>
    %cst_70 = arith.constant dense<0xFF800000> : vector<64xf32>
    %115 = vector.multi_reduction <maximumf>, %114, %cst_70 [0] : vector<16x64xf32> to vector<64xf32>
    %116 = vector.shape_cast %115 : vector<64xf32> to vector<1x64xf32>
    %117 = vector.broadcast %116 : vector<1x64xf32> to vector<16x64xf32>
    %118 = arith.subf %114, %117 : vector<16x64xf32>
    %119 = math.exp %118 : vector<16x64xf32>
    %cst_71 = arith.constant dense<0.000000e+00> : vector<16x64xf32>
    %120 = tpu.matmul %12, %119, %cst_71 {dimension_numbers = #tpu.dot_dimension_numbers<[1], [0], [0], [1], [0, 0, 1, 1], [], []>} : vector<16x16xf32>, vector<16x64xf32>, vector<16x64xf32> -> vector<16x64xf32>
    %121 = arith.mulf %119, %114 : vector<16x64xf32>
    %cst_72 = arith.constant dense<0.000000e+00> : vector<16x64xf32>
    %122 = tpu.matmul %12, %121, %cst_72 {dimension_numbers = #tpu.dot_dimension_numbers<[1], [0], [0], [1], [0, 0, 1, 1], [], []>} : vector<16x16xf32>, vector<16x64xf32>, vector<16x64xf32> -> vector<16x64xf32>
    %123 = tpu.reciprocal %120 {approx = true} : vector<16x64xf32> -> vector<16x64xf32>
    %cst_73 = arith.constant 0.000000e+00 : f32
    %124 = vector.broadcast %cst_73 : f32 to vector<16x64xf32>
    %125 = arith.cmpf ogt, %120, %124 : vector<16x64xf32>
    %126 = arith.mulf %122, %123 : vector<16x64xf32>
    %cst_74 = arith.constant 0.000000e+00 : f32
    %127 = vector.broadcast %cst_74 : f32 to vector<16x64xf32>
    %128 = arith.select %125, %126, %127 : vector<16x64xi1>, vector<16x64xf32>
    %129 = arith.addf %128, %110 : vector<16x64xf32>
    %c1 = arith.constant 1 : index
    %c0_75 = arith.constant 0 : index
    %c0_76 = arith.constant 0 : index
    %130 = vector.load %arg13[%c1, %c0_75, %c0_76] : memref<3x64x128xf32, #tpu.memory_space<vmem>>, vector<1x64x128xf32>
    %131 = vector.shape_cast %130 : vector<1x64x128xf32> to vector<64x128xf32>
    %c1_77 = arith.constant 1 : index
    %c0_78 = arith.constant 0 : index
    %c0_79 = arith.constant 0 : index
    %132 = vector.load %arg14[%c1_77, %c0_78, %c0_79] : memref<3x1x128xf32, #tpu.memory_space<vmem>>, vector<1x1x128xf32>
    %133 = vector.shape_cast %132 : vector<1x1x128xf32> to vector<1x128xf32>
    %c1_80 = arith.constant 1 : index
    %c0_81 = arith.constant 0 : index
    %c0_82 = arith.constant 0 : index
    %134 = vector.load %arg15[%c1_80, %c0_81, %c0_82] : memref<3x1x128xf32, #tpu.memory_space<vmem>>, vector<1x1x128xf32>
    %135 = vector.shape_cast %134 : vector<1x1x128xf32> to vector<1x128xf32>
    %c1_83 = arith.constant 1 : index
    %c0_84 = arith.constant 0 : index
    %c0_85 = arith.constant 0 : index
    %136 = vector.load %arg16[%c1_83, %c0_84, %c0_85] : memref<3x1x128xf32, #tpu.memory_space<vmem>>, vector<1x1x128xf32>
    %137 = vector.shape_cast %136 : vector<1x1x128xf32> to vector<1x128xf32>
    %c1_86 = arith.constant 1 : index
    %c0_87 = arith.constant 0 : index
    %c0_88 = arith.constant 0 : index
    %138 = vector.load %arg17[%c1_86, %c0_87, %c0_88] : memref<3x128x64xf32, #tpu.memory_space<vmem>>, vector<1x128x64xf32>
    %139 = vector.shape_cast %138 : vector<1x128x64xf32> to vector<128x64xf32>
    %c1_89 = arith.constant 1 : index
    %c0_90 = arith.constant 0 : index
    %c0_91 = arith.constant 0 : index
    %140 = vector.load %arg18[%c1_89, %c0_90, %c0_91] : memref<3x1x64xf32, #tpu.memory_space<vmem>>, vector<1x1x64xf32>
    %141 = vector.shape_cast %140 : vector<1x1x64xf32> to vector<1x64xf32>
    %cst_92 = arith.constant dense<0.000000e+00> : vector<16x128xf32>
    %142 = tpu.matmul %129, %131, %cst_92 {dimension_numbers = #tpu.dot_dimension_numbers<[1], [0], [0], [1], [0, 0, 1, 1], [], []>} : vector<16x64xf32>, vector<64x128xf32>, vector<16x128xf32> -> vector<16x128xf32>
    %143 = vector.broadcast %133 : vector<1x128xf32> to vector<16x128xf32>
    %144 = arith.addf %142, %143 : vector<16x128xf32>
    %145 = vector.broadcast %135 : vector<1x128xf32> to vector<16x128xf32>
    %146 = arith.mulf %144, %145 : vector<16x128xf32>
    %147 = vector.broadcast %137 : vector<1x128xf32> to vector<16x128xf32>
    %148 = arith.addf %146, %147 : vector<16x128xf32>
    %cst_93 = arith.constant 0.000000e+00 : f32
    %149 = vector.broadcast %cst_93 : f32 to vector<16x128xf32>
    %150 = arith.maximumf %148, %149 : vector<16x128xf32>
    %cst_94 = arith.constant dense<0.000000e+00> : vector<16x64xf32>
    %151 = tpu.matmul %150, %139, %cst_94 {dimension_numbers = #tpu.dot_dimension_numbers<[1], [0], [0], [1], [0, 0, 1, 1], [], []>} : vector<16x128xf32>, vector<128x64xf32>, vector<16x64xf32> -> vector<16x64xf32>
    %152 = vector.broadcast %141 : vector<1x64xf32> to vector<16x64xf32>
    %153 = arith.addf %151, %152 : vector<16x64xf32>
    %154 = arith.addf %108, %153 : vector<16x64xf32>
    %cst_95 = arith.constant 0.000000e+00 : f32
    %155 = vector.broadcast %cst_95 : f32 to vector<16x64xf32>
    %156 = arith.maximumf %154, %155 : vector<16x64xf32>
    %cst_96 = arith.constant 0.000000e+00 : f32
    %157 = vector.broadcast %cst_96 : f32 to vector<16x64xf32>
    %158 = arith.maximumf %156, %157 : vector<16x64xf32>
    %cst_97 = arith.constant 1.000000e-07 : f32
    %159 = vector.broadcast %cst_97 : f32 to vector<16x64xf32>
    %160 = arith.addf %158, %159 : vector<16x64xf32>
    %cst_98 = arith.constant dense<0xFF800000> : vector<64xf32>
    %161 = vector.multi_reduction <maximumf>, %160, %cst_98 [0] : vector<16x64xf32> to vector<64xf32>
    %162 = vector.shape_cast %161 : vector<64xf32> to vector<1x64xf32>
    %163 = vector.broadcast %162 : vector<1x64xf32> to vector<16x64xf32>
    %164 = arith.subf %160, %163 : vector<16x64xf32>
    %165 = math.exp %164 : vector<16x64xf32>
    %cst_99 = arith.constant dense<0.000000e+00> : vector<16x64xf32>
    %166 = tpu.matmul %12, %165, %cst_99 {dimension_numbers = #tpu.dot_dimension_numbers<[1], [0], [0], [1], [0, 0, 1, 1], [], []>} : vector<16x16xf32>, vector<16x64xf32>, vector<16x64xf32> -> vector<16x64xf32>
    %167 = arith.mulf %165, %160 : vector<16x64xf32>
    %cst_100 = arith.constant dense<0.000000e+00> : vector<16x64xf32>
    %168 = tpu.matmul %12, %167, %cst_100 {dimension_numbers = #tpu.dot_dimension_numbers<[1], [0], [0], [1], [0, 0, 1, 1], [], []>} : vector<16x16xf32>, vector<16x64xf32>, vector<16x64xf32> -> vector<16x64xf32>
    %169 = tpu.reciprocal %166 {approx = true} : vector<16x64xf32> -> vector<16x64xf32>
    %cst_101 = arith.constant 0.000000e+00 : f32
    %170 = vector.broadcast %cst_101 : f32 to vector<16x64xf32>
    %171 = arith.cmpf ogt, %166, %170 : vector<16x64xf32>
    %172 = arith.mulf %168, %169 : vector<16x64xf32>
    %cst_102 = arith.constant 0.000000e+00 : f32
    %173 = vector.broadcast %cst_102 : f32 to vector<16x64xf32>
    %174 = arith.select %171, %172, %173 : vector<16x64xi1>, vector<16x64xf32>
    %175 = arith.addf %174, %156 : vector<16x64xf32>
    %c2 = arith.constant 2 : index
    %c0_103 = arith.constant 0 : index
    %c0_104 = arith.constant 0 : index
    %176 = vector.load %arg13[%c2, %c0_103, %c0_104] : memref<3x64x128xf32, #tpu.memory_space<vmem>>, vector<1x64x128xf32>
    %177 = vector.shape_cast %176 : vector<1x64x128xf32> to vector<64x128xf32>
    %c2_105 = arith.constant 2 : index
    %c0_106 = arith.constant 0 : index
    %c0_107 = arith.constant 0 : index
    %178 = vector.load %arg14[%c2_105, %c0_106, %c0_107] : memref<3x1x128xf32, #tpu.memory_space<vmem>>, vector<1x1x128xf32>
    %179 = vector.shape_cast %178 : vector<1x1x128xf32> to vector<1x128xf32>
    %c2_108 = arith.constant 2 : index
    %c0_109 = arith.constant 0 : index
    %c0_110 = arith.constant 0 : index
    %180 = vector.load %arg15[%c2_108, %c0_109, %c0_110] : memref<3x1x128xf32, #tpu.memory_space<vmem>>, vector<1x1x128xf32>
    %181 = vector.shape_cast %180 : vector<1x1x128xf32> to vector<1x128xf32>
    %c2_111 = arith.constant 2 : index
    %c0_112 = arith.constant 0 : index
    %c0_113 = arith.constant 0 : index
    %182 = vector.load %arg16[%c2_111, %c0_112, %c0_113] : memref<3x1x128xf32, #tpu.memory_space<vmem>>, vector<1x1x128xf32>
    %183 = vector.shape_cast %182 : vector<1x1x128xf32> to vector<1x128xf32>
    %c2_114 = arith.constant 2 : index
    %c0_115 = arith.constant 0 : index
    %c0_116 = arith.constant 0 : index
    %184 = vector.load %arg17[%c2_114, %c0_115, %c0_116] : memref<3x128x64xf32, #tpu.memory_space<vmem>>, vector<1x128x64xf32>
    %185 = vector.shape_cast %184 : vector<1x128x64xf32> to vector<128x64xf32>
    %c2_117 = arith.constant 2 : index
    %c0_118 = arith.constant 0 : index
    %c0_119 = arith.constant 0 : index
    %186 = vector.load %arg18[%c2_117, %c0_118, %c0_119] : memref<3x1x64xf32, #tpu.memory_space<vmem>>, vector<1x1x64xf32>
    %187 = vector.shape_cast %186 : vector<1x1x64xf32> to vector<1x64xf32>
    %cst_120 = arith.constant dense<0.000000e+00> : vector<16x128xf32>
    %188 = tpu.matmul %175, %177, %cst_120 {dimension_numbers = #tpu.dot_dimension_numbers<[1], [0], [0], [1], [0, 0, 1, 1], [], []>} : vector<16x64xf32>, vector<64x128xf32>, vector<16x128xf32> -> vector<16x128xf32>
    %189 = vector.broadcast %179 : vector<1x128xf32> to vector<16x128xf32>
    %190 = arith.addf %188, %189 : vector<16x128xf32>
    %191 = vector.broadcast %181 : vector<1x128xf32> to vector<16x128xf32>
    %192 = arith.mulf %190, %191 : vector<16x128xf32>
    %193 = vector.broadcast %183 : vector<1x128xf32> to vector<16x128xf32>
    %194 = arith.addf %192, %193 : vector<16x128xf32>
    %cst_121 = arith.constant 0.000000e+00 : f32
    %195 = vector.broadcast %cst_121 : f32 to vector<16x128xf32>
    %196 = arith.maximumf %194, %195 : vector<16x128xf32>
    %cst_122 = arith.constant dense<0.000000e+00> : vector<16x64xf32>
    %197 = tpu.matmul %196, %185, %cst_122 {dimension_numbers = #tpu.dot_dimension_numbers<[1], [0], [0], [1], [0, 0, 1, 1], [], []>} : vector<16x128xf32>, vector<128x64xf32>, vector<16x64xf32> -> vector<16x64xf32>
    %198 = vector.broadcast %187 : vector<1x64xf32> to vector<16x64xf32>
    %199 = arith.addf %197, %198 : vector<16x64xf32>
    %200 = arith.addf %154, %199 : vector<16x64xf32>
    %cst_123 = arith.constant dense<0xFF800000> : vector<64xf32>
    %201 = vector.multi_reduction <maximumf>, %200, %cst_123 [0] : vector<16x64xf32> to vector<64xf32>
    %202 = vector.shape_cast %201 : vector<64xf32> to vector<1x64xf32>
    %c0_124 = arith.constant 0 : index
    %c0_125 = arith.constant 0 : index
    %203 = vector.load %arg19[%c0_124, %c0_125] : memref<64x64xf32, #tpu.memory_space<vmem>>, vector<64x64xf32>
    %cst_126 = arith.constant dense<0.000000e+00> : vector<1x64xf32>
    %204 = tpu.matmul %202, %203, %cst_126 {dimension_numbers = #tpu.dot_dimension_numbers<[1], [0], [0], [1], [0, 0, 1, 1], [], []>} : vector<1x64xf32>, vector<64x64xf32>, vector<1x64xf32> -> vector<1x64xf32>
    %c0_127 = arith.constant 0 : index
    %c0_128 = arith.constant 0 : index
    %205 = vector.load %arg20[%c0_127, %c0_128] : memref<1x64xf32, #tpu.memory_space<vmem>>, vector<1x64xf32>
    %206 = arith.addf %204, %205 : vector<1x64xf32>
    %cst_129 = arith.constant 0.000000e+00 : f32
    %207 = vector.broadcast %cst_129 : f32 to vector<1x64xf32>
    %208 = arith.maximumf %206, %207 : vector<1x64xf32>
    %c0_130 = arith.constant 0 : index
    %c0_131 = arith.constant 0 : index
    %209 = vector.load %arg21[%c0_130, %c0_131] : memref<64x80xf32, #tpu.memory_space<vmem>>, vector<64x80xf32>
    %cst_132 = arith.constant dense<0.000000e+00> : vector<1x80xf32>
    %210 = tpu.matmul %208, %209, %cst_132 {dimension_numbers = #tpu.dot_dimension_numbers<[1], [0], [0], [1], [0, 0, 1, 1], [], []>} : vector<1x64xf32>, vector<64x80xf32>, vector<1x80xf32> -> vector<1x80xf32>
    %c0_133 = arith.constant 0 : index
    %c0_134 = arith.constant 0 : index
    %211 = vector.load %arg22[%c0_133, %c0_134] : memref<1x80xf32, #tpu.memory_space<vmem>>, vector<1x80xf32>
    %212 = arith.addf %210, %211 : vector<1x80xf32>
    %c0_135 = arith.constant 0 : index
    %c0_136 = arith.constant 0 : index
    %213 = vector.load %arg23[%c0_135, %c0_136] : memref<1x80xf32, #tpu.memory_space<vmem>>, vector<1x80xf32>
    tpu.vector_store %arg23[%c0_135, %c0_136], %212 {strides = array<i32>} : memref<1x80xf32, #tpu.memory_space<vmem>>, vector<1x80xf32>,
    return
  }
}

</mosaic_0001>

<bundles_post_ra>
// kernel: shape_encoder_forward.1
= control target key start
LH: loop header
LB: loop body
LE: loop exit
PB: predicated region body
PF: predicated region fallthrough
CT: control target
= control target key end

     0   :  { %s4037_s0 = inlined_call_operand.vmem [shape: f32[16,6], index: 0, kind: input, shape index: {}]   ;;  %s4038_s1 = inlined_call_operand.vmem [shape: s32[128,1], index: 1, kind: input, shape index: {}]   ;;  %s4039_s2 = inlined_call_operand.vmem [shape: s32[1,128], index: 2, kind: input, shape index: {}]   ;;  %s4040_s3 = inlined_call_operand.vmem [shape: f32[6,64], index: 3, kind: input, shape index: {}]   ;;  %s4041_s4 = inlined_call_operand.vmem [shape: f32[1,64], index: 4, kind: input, shape index: {}]   ;;  %s4042_s5 = inlined_call_operand.vmem [shape: f32[6,64], index: 5, kind: input, shape index: {}]   ;;  %s4043_s6 = inlined_call_operand.vmem [shape: f32[1,64], index: 6, kind: input, shape index: {}]   ;;  %s4044_s7 = inlined_call_operand.vmem [shape: f32[64,128], index: 7, kind: input, shape index: {}]   ;;  %s4045_s8 = inlined_call_operand.vmem [shape: f32[1,128], index: 8, kind: input, shape index: {}]   ;;  %s4046_s9 = inlined_call_operand.vmem [shape: f32[1,128], index: 9, kind: input, shape index: {}]   ;;  %s4047_s10 = inlined_call_operand.vmem [shape: f32[1,128], index: 10, kind: input, shape index: {}]   ;;  %s4048_s11 = inlined_call_operand.vmem [shape: f32[128,64], index: 11, kind: input, shape index: {}]   ;;  %s4049_s12 = inlined_call_operand.vmem [shape: f32[1,64], index: 12, kind: input, shape index: {}]   ;;  %s4050_s13 = inlined_call_operand.vmem [shape: f32[3,64,128], index: 13, kind: input, shape index: {}]   ;;  %s4051_s14 = inlined_call_operand.vmem [shape: f32[3,1,128], index: 14, kind: input, shape index: {}]   ;;  %s4052_s15 = inlined_call_operand.vmem [shape: f32[3,1,128], index: 15, kind: input, shape index: {}]   ;;  %s4053_s16 = inlined_call_operand.vmem [shape: f32[3,1,128], index: 16, kind: input, shape index: {}]   ;;  %s4054_s17 = inlined_call_operand.vmem [shape: f32[3,128,64], index: 17, kind: input, shape index: {}]   ;;  %s4055_s18 = inlined_call_operand.vmem [shape: f32[3,1,64], index: 18, kind: input, shape index: {}]   ;;  %s4056_s19 = inlined_call_operand.vmem [shape: f32[64,64], index: 19, kind: input, shape index: {}]   ;;  %s4057_s20 = inlined_call_operand.vmem [shape: f32[1,64], index: 20, kind: input, shape index: {}]   ;;  %s4058_s21 = inlined_call_operand.vmem [shape: f32[64,80], index: 21, kind: input, shape index: {}]   ;;  %s4059_s22 = inlined_call_operand.vmem [shape: f32[1,80], index: 22, kind: input, shape index: {}]   ;;  %s4060_s23 = inlined_call_operand.hbm [shape: f32[1,80], index: 23, kind: output, shape index: {}]  }
   0x1   :  { %4064 = sst [smem:[#allocation5_spill]] %s4037_s0 }
   0x2   :  { %4065 = sst [smem:[#allocation6_spill]] %s4038_s1 }
   0x3   :  { %4066 = sst [smem:[#allocation7_spill]] %s4039_s2 }
   0x4   :  { %4067 = sst [smem:[#allocation8_spill]] %s4040_s3 }
   0x5   :  { %4068 = sst [smem:[#allocation9_spill]] %s4041_s4 }
   0x6   :  { %4069 = sst [smem:[#allocation10_spill]] %s4042_s5 }
   0x7   :  { %4070 = sst [smem:[#allocation11_spill]] %s4043_s6 }
   0x8   :  { %4071 = sst [smem:[#allocation12_spill]] %s4044_s7 }
   0x9   :  { %s4072_s24 = sld [smem:[#allocation6_spill]]  ;;  %v3293_v2 = vmov 0  }
   0xa   :  { %3236 = vset.pattern.permute.xlu1 %v3293_v2  ;;  %3235 = vset.pattern.permute.xlu0 %v3293_v2 }
   0xf   :  { %v93_v0 = vld [vmem:[%s4072_s24 + $0x10] sm:$0xff]  ;;  %v91_v1 = vld [vmem:[%s4072_s24] sm:$0xff]  ;;  %v94_v3 = vld [vmem:[%s4072_s24 + $0x18] sm:$0xff] }
  0x10   :  { %114 = vperm.xlu1 %3236, %v93_v0   ;;  %108 = vperm.xlu0 %3235, %v91_v1   ;;  %v92_v4 = vld [vmem:[%s4072_s24 + $0x8] sm:$0xff] }
  0x11   :  { %28 = vsyncpa [#allocation3], 0  ;;  %v96_v5 = vld [vmem:[%s4072_s24 + $0x28] sm:$0xff]  ;;  %v95_v6 = vld [vmem:[%s4072_s24 + $0x20] sm:$0xff]  ;;  %v75_v17 = vlaneseq  ;;  %s4073_s2 = sld [smem:[#allocation7_spill]]  ;;  %v3294_v21 = vmov 1.0  }
  0x12   :  { %v98_v7 = vld [vmem:[%s4072_s24 + $0x38] sm:$0xff]  ;;  %v97_v8 = vld [vmem:[%s4072_s24 + $0x30] sm:$0xff]  ;;  %v100_v9 = vld [vmem:[%s4072_s24 + $0x48] sm:$0xff]  ;;  %s4074_s27 = sld [smem:[#allocation5_spill]]  ;;  %vm288_vm2 = vcmask 48128   ;;  %vm295_vm3 = vcmask 1045504  }
  0x13   :  { %v99_v10 = vld [vmem:[%s4072_s24 + $0x40] sm:$0xff]  ;;  %v102_v11 = vld [vmem:[%s4072_s24 + $0x58] sm:$0xff]  ;;  %v101_v12 = vld [vmem:[%s4072_s24 + $0x50] sm:$0xff]  ;;  %v76_v18 = vshrl.u32 %v75_v17, 7  ;;  %s4075_s29 = sld [smem:[#allocation10_spill]]  ;;  %v90_v27 = vand.u32 127, %v75_v17 }
  0x14   :  { %117 = vperm.xlu1 %3236, %v94_v3   ;;  %111 = vperm.xlu0 %3235, %v92_v4   ;;  %v104_v13 = vld [vmem:[%s4072_s24 + $0x68] sm:$0xff]  ;;  %v103_v14 = vld [vmem:[%s4072_s24 + $0x60] sm:$0xff]  ;;  %v106_v15 = vld [vmem:[%s4072_s24 + $0x78] sm:$0xff]  ;;  %v3295_v30 = vmov 1.0|1.0   ;;  %s4076_s25 = sld [smem:[#allocation8_spill]] }
  0x15   :  { %v105_v16 = vld [vmem:[%s4072_s24 + $0x70] sm:$0xff]  ;;  %v3468_v19 = vadd.s32 8, %v76_v18  ;;  %s4077_s26 = sld [smem:[#allocation9_spill]]  ;;  %s4078_s6 = sld [smem:[#allocation12_spill]] }
  0x16   :  { %s4079_s0 = sld [smem:[#allocation11_spill]] }
  0x17   :  { %v3473_v20 = vld [vmem:[%s4073_s2] ss:$0 sm:$0xff] }
  0x18   :  { %123 = vperm.xlu1 %3236, %v96_v5   ;;  %120 = vperm.xlu0 %3235, %v95_v6   ;;  %vm83_vm0 = vcmp.eq.s32.totalorder %v76_v18, %v3473_v20  ;;  %vm84_vm1 = vcmp.eq.s32.totalorder %v3468_v19, %v3473_v20  ;;  %v3482_v22 = vld [vmem:[%s4074_s27] sm:$0xff]  ;;  %v3493_v24 = vld [vmem:[%s4074_s27 + $0x8] sm:$0xff] }
  0x19   :  { %2625 = vmatprep.mubr.msk.f32.mxu0 %vm83_vm0, %v3294_v21  ;;  %2635 = vmatprep.mubr.msk.f32.mxu1 %vm288_vm2, %v3482_v22  ;;  %v374_v23 = vld [vmem:[%s4075_s29] sm:$0x3f] }
  0x1a   :  { %2633 = vmatprep.subr.msk.mxu1 %vm295_vm3, %v374_v23  ;;  %v280_v43 = vld [vmem:[%s4076_s25] sm:$0x3f] }
  0x1b   :  { %2634 = vmatpush3.msk.msra.mxu1 %vm295_vm3, %v374_v23  ;;  %v2301_v48 = vld [vmem:[%s4077_s26] ss:$0 sm:$0xff]  ;;  %v654_v19 = vld [vmem:[%s4078_s6 + $0x28] sm:$0xff] }
  0x1c   :  { %129 = vperm.xlu1 %3236, %v98_v7   ;;  %126 = vperm.xlu0 %3235, %v97_v8   ;;  %v653_v18 = vld [vmem:[%s4078_s6 + $0x20] sm:$0xff] }
  0x1d   :  { %2636 = vmatmul.mubr.msk.f32.vlgmr.msra.gmra.mrb[0].mxu1 %vm288_vm2, %v3493_v24  ;;  %v2996_v20 = vpack.c.bf16 %v654_v19, %v653_v18 }
  0x20   :  { %135 = vperm.xlu1 %3236, %v100_v9   ;;  %132 = vperm.xlu0 %3235, %v99_v10  }
  0x24   :  { %141 = vperm.xlu1 %3236, %v102_v11   ;;  %138 = vperm.xlu0 %3235, %v101_v12   ;;  %v649_v12 = vld [vmem:[%s4078_s6] sm:$0xff] }
  0x28   :  { %147 = vperm.xlu1 %3236, %v104_v13   ;;  %144 = vperm.xlu0 %3235, %v103_v14   ;;  %v650_v13 = vld [vmem:[%s4078_s6 + $0x8] sm:$0xff] }
  0x29   :  { %v2988_v14 = vpack.c.bf16 %v650_v13, %v649_v12 }
  0x2c   :  { %153 = vperm.xlu1 %3236, %v106_v15   ;;  %150 = vperm.xlu0 %3235, %v105_v16   ;;  %v651_v15 = vld [vmem:[%s4078_s6 + $0x10] sm:$0xff]  ;;  %v652_v16 = vld [vmem:[%s4078_s6 + $0x18] sm:$0xff] }
  0x2d   :  { %v2992_v17 = vpack.c.bf16 %v652_v16, %v651_v15 }
  0x8f   :  { %v115_v25 = vpop.permute.xlu1 %114  ;;  %v109_v26 = vpop.permute.xlu0 %108 }
  0x90   :  { %vm157_vm5 = vcmp.eq.s32.totalorder %v90_v27, %v115_v25  ;;  %vm155_vm6 = vcmp.eq.s32.totalorder %v90_v27, %v109_v26  ;;  %v661_v25 = vld [vmem:[%s4048_s11 + $0x8] sm:$0xff] }
  0x93   :  { %v118_v28 = vpop.permute.xlu1 %117  ;;  %v112_v29 = vpop.permute.xlu0 %111 }
  0x94   :  { %vm156_vm4 = vcmp.eq.s32.totalorder %v90_v27, %v112_v29  ;;  %vm158_vm7 = vcmp.eq.s32.totalorder %v90_v27, %v118_v28 }
  0x95   :  { %vm2948_vm8 = vmpackc.low %vm156_vm4, %vm155_vm6 }
  0x96   :  { %2949 = vmatprep.subr.msk.bf16.mxu0 %vm2948_vm8, %v3295_v30  ;;  %vm2952_vm9 = vmpackc.low %vm158_vm7, %vm157_vm5 }
  0x97   :  { %v124_v31 = vpop.permute.xlu1 %123  ;;  %v121_v32 = vpop.permute.xlu0 %120  ;;  %2951 = vmatpush3.bf16.msk.msra.mxu0 %vm2948_vm8, %v3295_v30 }
  0x98   :  { %vm160_vm10 = vcmp.eq.s32.totalorder %v90_v27, %v124_v31  ;;  %vm159_vm11 = vcmp.eq.s32.totalorder %v90_v27, %v121_v32  ;;  %2953 = vmatprep.subr.msk.bf16.mxu0 %vm2952_vm9, %v3295_v30  ;;  %v2305_v31 = vld [vmem:[%s4079_s0] ss:$0 sm:$0xff] }
  0x99   :  { %vm2956_vm12 = vmpackc.low %vm160_vm10, %vm159_vm11 }
  0x9b   :  { %v130_v33 = vpop.permute.xlu1 %129  ;;  %v127_v34 = vpop.permute.xlu0 %126  ;;  %2955 = vmatpush3.bf16.msk.msra.mxu0 %vm2952_vm9, %v3295_v30 }
  0x9c   :  { %vm162_vm13 = vcmp.eq.s32.totalorder %v90_v27, %v130_v33  ;;  %vm161_vm14 = vcmp.eq.s32.totalorder %v90_v27, %v127_v34  ;;  %2957 = vmatprep.subr.msk.bf16.mxu0 %vm2956_vm12, %v3295_v30 }
  0x9d   :  { %vm2960_vm15 = vmpackc.low %vm162_vm13, %vm161_vm14 }
  0x9f   :  { %v136_v35 = vpop.permute.xlu1 %135  ;;  %v133_v36 = vpop.permute.xlu0 %132  ;;  %2959 = vmatpush3.bf16.msk.msra.mxu0 %vm2956_vm12, %v3295_v30 }
  0xa0   :  { %vm164_vm0 = vcmp.eq.s32.totalorder %v90_v27, %v136_v35  ;;  %vm163_vm4 = vcmp.eq.s32.totalorder %v90_v27, %v133_v36  ;;  %2961 = vmatprep.subr.msk.bf16.mxu0 %vm2960_vm15, %v3295_v30 }
  0xa1   :  { %vm2964_vm5 = vmpackc.low %vm164_vm0, %vm163_vm4 }
  0xa3   :  { %v142_v37 = vpop.permute.xlu1 %141  ;;  %v139_v38 = vpop.permute.xlu0 %138  ;;  %2963 = vmatpush3.bf16.msk.msra.mxu0 %vm2960_vm15, %v3295_v30  ;;  %vm480_vm15 = vcmask 130048  }
  0xa4   :  { %vm166_vm6 = vcmp.eq.s32.totalorder %v90_v27, %v142_v37  ;;  %vm165_vm7 = vcmp.eq.s32.totalorder %v90_v27, %v139_v38  ;;  %2965 = vmatprep.subr.msk.bf16.mxu0 %vm2964_vm5, %v3295_v30 }
  0xa5   :  { %vm2968_vm8 = vmpackc.low %vm166_vm6, %vm165_vm7 }
  0xa7   :  { %v148_v39 = vpop.permute.xlu1 %147  ;;  %v145_v40 = vpop.permute.xlu0 %144  ;;  %2967 = vmatpush3.bf16.msk.msra.mxu0 %vm2964_vm5, %v3295_v30 }
  0xa8   :  { %vm168_vm9 = vcmp.eq.s32.totalorder %v90_v27, %v148_v39  ;;  %vm167_vm10 = vcmp.eq.s32.totalorder %v90_v27, %v145_v40  ;;  %2969 = vmatprep.subr.msk.bf16.mxu0 %vm2968_vm8, %v3295_v30  ;;  %v662_v39 = vld [vmem:[%s4048_s11 + $0x10] sm:$0xff]  ;;  %v663_v40 = vld [vmem:[%s4048_s11 + $0x18] sm:$0xff] }
  0xa9   :  { %vm2972_vm11 = vmpackc.low %vm168_vm9, %vm167_vm10  ;;  %vm3297_vm9 = vmmov 0   ;;  %vm2248_vm10 = vcmask 647168  }
  0xab   :  { %v154_v41 = vpop.permute.xlu1 %153  ;;  %v151_v42 = vpop.permute.xlu0 %150  ;;  %2971 = vmatpush3.bf16.msk.msra.mxu0 %vm2968_vm8, %v3295_v30 }
  0xac   :  { %vm170_vm12 = vcmp.eq.s32.totalorder %v90_v27, %v154_v41  ;;  %vm169_vm13 = vcmp.eq.s32.totalorder %v90_v27, %v151_v42  ;;  %2973 = vmatprep.subr.msk.bf16.mxu0 %vm2972_vm11, %v3295_v30 }
  0xad   :  { %vm2976_vm14 = vmpackc.low %vm170_vm12, %vm169_vm13 }
  0xaf   :  { %2975 = vmatpush3.bf16.msk.msra.mxu0 %vm2972_vm11, %v3295_v30 }
  0xb0   :  { %2977 = vmatprep.subr.msk.bf16.mxu0 %vm2976_vm14, %v3295_v30 }
  0xb3   :  { %2979 = vmatpush3.bf16.msk.msra.mxu0 %vm2976_vm14, %v3295_v30 }
  0xb4   :  { %2628 = vmatprep.subr.msk.mxu0 %vm295_vm3, %v280_v43 }
  0xb6   :  { %2626 = vmatmul.mubr.msk.f32.vlgmr.msra.gmra.mrb[0].mxu0 %vm84_vm1, %v3294_v21  ;;  %vm464_vm1 = vcmask 523264   ;;  %v655_v21 = vld [vmem:[%s4078_s6 + $0x30] sm:$0xff] }
  0xb7   :  { %2629 = vmatpush3.msk.msra.mxu0 %vm295_vm3, %v280_v43  ;;  %2630 = vmatprep.mubr.msk.f32.mxu0 %vm288_vm2, %v3482_v22  ;;  %v656_v22 = vld [vmem:[%s4078_s6 + $0x38] sm:$0xff]  ;;  %s3299_s6 = smov [#allocation2]  }
  0xb8   :  { %v3000_v23 = vpack.c.bf16 %v656_v22, %v655_v21 }
  0xba   :  { %2631 = vmatmul.mubr.msk.f32.vlgmr.msra.gmra.mrb[2].mxu0 %vm288_vm2, %v3493_v24  ;;  %v660_v24 = vld [vmem:[%s4048_s11] sm:$0xff] }
  0xbb   :  { %v3004_v26 = vpack.c.bf16 %v661_v25, %v660_v24 }
  0xf0   :  { %v3511_v44 = vpop.f32.mrb[0].mxu1 }
  0xf1   :  { %v3513_v45 = vpop.f32.mrb[1].mxu1  ;;  %v457_v35 = vadd.f32 %v3511_v44, %v2305_v31  ;;  %v664_v44 = vld [vmem:[%s4048_s11 + $0x20] sm:$0xff] }
  0xf2   :  { %v452_v37 = vadd.f32 %v2305_v31, %v3513_v45  ;;  %v665_v45 = vld [vmem:[%s4048_s11 + $0x28] sm:$0xff] }
 0x189   :  { %v3515_v46 = vpop.f32.mrb[0].mxu0 }
 0x18a   :  { %v3517_v47 = vpop.f32.mrb[1].mxu0 }
 0x18b   :  { %2642 = vmatprep.mubr.msk.f32.mxu1 %vm480_vm15, %v3517_v47  ;;  %2710 = vmatprep.mubr.msk.f32.mxu0 %vm480_vm15, %v3517_v47 }
 0x18d   :  { %v2632_v49 = vpop.f32.mrb[2].mxu0 }
 0x18e   :  { %v371_v50 = vadd.f32 %v2632_v49, %v2301_v48  ;;  %v365_v51 = vpop.f32.mrb[3].mxu0  ;;  %v3012_v49 = vpack.c.bf16 %v665_v45, %v664_v44  ;;  %v1048_v45 = vld [vmem:[%s4050_s13] sm:$0xff] }
 0x18f   :  { %v366_v52 = vadd.f32 %v2301_v48, %v365_v51  ;;  %v3008_v48 = vpack.c.bf16 %v663_v40, %v662_v39  ;;  %v667_v51 = vld [vmem:[%s4048_s11 + $0x38] sm:$0xff] }
 0x190   :  { %v461_v53 = vmax.f32 %v371_v50, 0.0  ;;  %v666_v50 = vld [vmem:[%s4048_s11 + $0x30] sm:$0xff] }
 0x191   :  { %v460_v54 = vmax.f32 %v366_v52, 0.0  ;;  %v3016_v52 = vpack.c.bf16 %v667_v51, %v666_v50  ;;  %v1050_v51 = vld [vmem:[%s4050_s13 + $0x10] sm:$0xff] }
 0x192   :  { %v463_v55 = vadd.f32 1e-07, %v461_v53  ;;  %v668_v53 = vld [vmem:[%s4048_s11 + $0x40] sm:$0xff] }
 0x193   :  { %v462_v56 = vadd.f32 1e-07, %v460_v54  ;;  %v669_v54 = vld [vmem:[%s4048_s11 + $0x48] sm:$0xff] }
 0x194   :  { %v466_v57 = vsel %vm464_vm1, %v463_v55, -inf }
 0x195   :  { %v465_v58 = vsel %vm464_vm1, %v462_v56, -inf }
 0x196   :  { %v467_v59 = vmax.f32 %v465_v58, %v466_v57  ;;  %v671_v57 = vld [vmem:[%s4048_s11 + $0x58] sm:$0xff] }
 0x198   :  { %v468_v60 = vrot.slane %v467_v59, 4 }
 0x19a   :  { %v469_v61 = vmax.f32 %v467_v59, %v468_v60  ;;  %v672_v59 = vld [vmem:[%s4048_s11 + $0x60] sm:$0xff]  ;;  %v673_v60 = vld [vmem:[%s4048_s11 + $0x68] sm:$0xff] }
 0x19c   :  { %v470_v62 = vrot.slane %v469_v61, 2 }
 0x19e   :  { %v471_v63 = vmax.f32 %v469_v61, %v470_v62  ;;  %v3028_v61 = vpack.c.bf16 %v673_v60, %v672_v59  ;;  %v674_v62 = vld [vmem:[%s4048_s11 + $0x70] sm:$0xff]  ;;  %v1059_v60 = vld [vmem:[%s4054_s17] sm:$0xff] }
 0x1a0   :  { %v472_v0 = vrot.slane %v471_v63, 1 }
 0x1a2   :  { %v473_v1 = vmax.f32 %v471_v63, %v472_v0  ;;  %v675_v63 = vld [vmem:[%s4048_s11 + $0x78] sm:$0xff] }
 0x1a3   :  { %v3032_v0 = vpack.c.bf16 %v675_v63, %v674_v62 }
 0x1a4   :  { %v474_v2 = vsub.f32 %v462_v56, %v473_v1  ;;  %v475_v3 = vsub.f32 %v463_v55, %v473_v1  ;;  %v2313_v1 = vld [vmem:[%s4045_s8] ss:$0 sm:$0xff] }
 0x1a6   :  { %v476_v4 = vmul.f32 1.442695, %v474_v2  ;;  %v478_v5 = vmul.f32 1.442695, %v475_v3  ;;  %v2316_v2 = vld [vmem:[%s4046_s9] ss:$0 sm:$0xff] }
 0x1a8   :  { %3237 = vpow2.f32 %v476_v4 }
 0x1a9   :  { %3239 = vpow2.f32 %v478_v5 }
 0x1b2   :  { %v3238_v6 = vpop.eup %3237 }
 0x1b3   :  { %v3240_v7 = vpop.eup %3239  ;;  %v562_v8 = vmul.f32 %v3238_v6, %v462_v56  ;;  %v670_v56 = vld [vmem:[%s4048_s11 + $0x50] sm:$0xff] }
 0x1b4   :  { %v2980_v9 = vpack.c.bf16 %v3240_v7, %v3238_v6  ;;  %v563_v10 = vmul.f32 %v3240_v7, %v463_v55  ;;  %v3020_v55 = vpack.c.bf16 %v669_v54, %v668_v53  ;;  %v3024_v58 = vpack.c.bf16 %v671_v57, %v670_v56  ;;  %v2317_v6 = vld [vmem:[%s4047_s10] ss:$0 sm:$0xff]  ;;  %v1054_v57 = vld [vmem:[%s4050_s13 + $0x30] sm:$0xff] }
 0x1b5   :  { %v1052_v54 = vld [vmem:[%s4050_s13 + $0x20] sm:$0xff] }
 0x1b6   :  { %2981 = vmatprep.subr.bf16.mxu1 %v2980_v9  ;;  %v2984_v11 = vpack.c.bf16 %v563_v10, %v562_v8 }
 0x1b7   :  { %2983 = vmatpush3.bf16.msra.mxu1 %v2980_v9 }
 0x1b8   :  { %2985 = vmatprep.subr.bf16.mxu1 %v2984_v11 }
 0x1ba   :  { %2643 = vmatmul.mubr.msk.f32.vlgmr.msra.gmra.mrb[2].mxu1 %vm480_vm15, %v3515_v46 }
 0x1bb   :  { %2987 = vmatpush3.bf16.msra.mxu1 %v2984_v11  ;;  %2649 = vmatprep.mubr.msk.f32.mxu1 %vm480_vm15, %v3517_v47 }
 0x1bc   :  { %2989 = vmatprep.subr.bf16.mxu1 %v2988_v14 }
 0x1be   :  { %2650 = vmatmul.mubr.msk.f32.vlgmr.msra.gmra.mrb[4].mxu1 %vm480_vm15, %v3515_v46 }
 0x1bf   :  { %2991 = vmatpush3.bf16.msra.mxu1 %v2988_v14  ;;  %v2318_v14 = vld [vmem:[%s4049_s12] ss:$0 sm:$0xff] }
 0x1c0   :  { %2993 = vmatprep.subr.bf16.mxu1 %v2992_v17 }
 0x1c3   :  { %2995 = vmatpush3.bf16.msra.mxu1 %v2992_v17 }
 0x1c4   :  { %2997 = vmatprep.subr.bf16.mxu1 %v2996_v20 }
 0x1c7   :  { %2999 = vmatpush3.bf16.msra.mxu1 %v2996_v20 }
 0x1c8   :  { %3001 = vmatprep.subr.bf16.mxu1 %v3000_v23 }
 0x1cb   :  { %3003 = vmatpush3.bf16.msra.mxu1 %v3000_v23 }
 0x1cc   :  { %3005 = vmatprep.subr.bf16.mxu1 %v3004_v26 }
 0x28d   :  { %v2644_v27 = vpop.f32.mrb[2].mxu1 }
 0x28e   :  { %3241 = vrcp.f32 %v2644_v27  ;;  %v553_v28 = vpop.f32.mrb[3].mxu1  ;;  %vm642_vm2 = vcmp.gt.f32.partialorder %v2644_v27, 0.0 }
 0x28f   :  { %3243 = vrcp.f32 %v553_v28  ;;  %vm641_vm3 = vcmp.gt.f32.partialorder %v553_v28, 0.0 }
 0x291   :  { %v2651_v29 = vpop.f32.mrb[4].mxu1 }
 0x292   :  { %v630_v30 = vpop.f32.mrb[5].mxu1 }
 0x298   :  { %v3242_v32 = vpop.eup %3241 }
 0x299   :  { %v3244_v33 = vpop.eup %3243  ;;  %v644_v34 = vmul.f32 %v3242_v32, %v2651_v29 }
 0x29a   :  { %v643_v36 = vmul.f32 %v3244_v33, %v630_v30 }
 0x29b   :  { %v646_v38 = vsel %vm642_vm2, %v644_v34, 0.0 }
 0x29c   :  { %v648_v41 = vadd.f32 %v646_v38, %v457_v35  ;;  %v645_v42 = vsel %vm641_vm3, %v643_v36, 0.0 }
 0x29d   :  { %v647_v43 = vadd.f32 %v645_v42, %v452_v37 }
 0x29f   :  { %2668 = vmatprep.mubr.msk.f32.mxu1 %vm464_vm1, %v647_v43 }
 0x2a0   :  { %2669 = vmatmul.mubr.msk.f32.vlgmr.msra.gmra.mrb[6].mxu1 %vm464_vm1, %v648_v41 }
 0x2a1   :  { %3007 = vmatpush3.bf16.msra.mxu1 %v3004_v26 }
 0x2a2   :  { %3009 = vmatprep.subr.bf16.mxu1 %v3008_v48 }
 0x2a5   :  { %3011 = vmatpush3.bf16.msra.mxu1 %v3008_v48 }
 0x2a6   :  { %3013 = vmatprep.subr.bf16.mxu1 %v3012_v49 }
 0x2a9   :  { %3015 = vmatpush3.bf16.msra.mxu1 %v3012_v49  ;;  %v1049_v49 = vld [vmem:[%s4050_s13 + $0x8] sm:$0xff] }
 0x2aa   :  { %3017 = vmatprep.subr.bf16.mxu1 %v3016_v52  ;;  %v3044_v50 = vpack.c.bf16 %v1049_v49, %v1048_v45 }
 0x2ad   :  { %3019 = vmatpush3.bf16.msra.mxu1 %v3016_v52  ;;  %v1051_v52 = vld [vmem:[%s4050_s13 + $0x18] sm:$0xff] }
 0x2ae   :  { %3021 = vmatprep.subr.bf16.mxu1 %v3020_v55  ;;  %v3048_v53 = vpack.c.bf16 %v1051_v52, %v1050_v51  ;;  %v2328_v51 = vld [vmem:[%s4055_s18] ss:$0 sm:$0xff] }
 0x2b1   :  { %3023 = vmatpush3.bf16.msra.mxu1 %v3020_v55  ;;  %v1053_v55 = vld [vmem:[%s4050_s13 + $0x28] sm:$0xff] }
 0x2b2   :  { %3025 = vmatprep.subr.bf16.mxu1 %v3024_v58  ;;  %v3052_v56 = vpack.c.bf16 %v1053_v55, %v1052_v54 }
 0x2b5   :  { %3027 = vmatpush3.bf16.msra.mxu1 %v3024_v58  ;;  %v1055_v58 = vld [vmem:[%s4050_s13 + $0x38] sm:$0xff] }
 0x2b6   :  { %3029 = vmatprep.subr.bf16.mxu1 %v3028_v61  ;;  %v3056_v59 = vpack.c.bf16 %v1055_v58, %v1054_v57 }
 0x2b9   :  { %3031 = vmatpush3.bf16.msra.mxu1 %v3028_v61  ;;  %v1060_v61 = vld [vmem:[%s4054_s17 + $0x8] sm:$0xff] }
 0x2ba   :  { %3033 = vmatprep.subr.bf16.mxu1 %v3032_v0  ;;  %v3060_v62 = vpack.c.bf16 %v1060_v61, %v1059_v60 }
 0x2bd   :  { %3035 = vmatpush3.bf16.msra.mxu1 %v3032_v0 }
 0x373   :  { %v2670_v3 = vpop.f32.mrb[6].mxu1 }
 0x374   :  { %v761_v4 = vadd.f32 %v2670_v3, %v2313_v1  ;;  %v755_v5 = vpop.f32.mrb[7].mxu1 }
 0x375   :  { %v756_v7 = vadd.f32 %v2313_v1, %v755_v5 }
 0x376   :  { %v771_v8 = vmul.f32 %v2316_v2, %v761_v4 }
 0x377   :  { %v770_v9 = vmul.f32 %v2316_v2, %v756_v7 }
 0x378   :  { %v779_v10 = vadd.f32 %v2317_v6, %v771_v8  ;;  %v1061_v8 = vld [vmem:[%s4054_s17 + $0x10] sm:$0xff] }
 0x379   :  { %v778_v11 = vadd.f32 %v2317_v6, %v770_v9  ;;  %v1062_v9 = vld [vmem:[%s4054_s17 + $0x18] sm:$0xff] }
 0x37a   :  { %v781_v13 = vmax.f32 %v779_v10, 0.0 }
 0x37b   :  { %v780_v12 = vmax.f32 %v778_v11, 0.0 }
 0x37d   :  { %2703 = vmatprep.mubr.f32.mxu1 %v780_v12 }
 0x37e   :  { %2704 = vmatmul.mubr.f32.vlgmr.msra.gmra.mrb[8].mxu1 %v781_v13  ;;  %v3064_v13 = vpack.c.bf16 %v1062_v9, %v1061_v8 }
 0x37f   :  { %2778 = vmatprep.mubr.msk.f32.mxu1 %vm480_vm15, %v3517_v47 }
 0x451   :  { %v2705_v15 = vpop.f32.mrb[8].mxu1 }
 0x452   :  { %v3627_v16 = vadd.f32 %v2705_v15, %v2318_v14  ;;  %v854_v17 = vpop.f32.mrb[9].mxu1  ;;  %v1064_v15 = vld [vmem:[%s4054_s17 + $0x28] sm:$0xff] }
 0x453   :  { %v3629_v18 = vadd.f32 %v2318_v14, %v854_v17  ;;  %v1063_v14 = vld [vmem:[%s4054_s17 + $0x20] sm:$0xff] }
 0x454   :  { %v864_v19 = vmax.f32 %v3627_v16, 0.0  ;;  %v3068_v17 = vpack.c.bf16 %v1064_v15, %v1063_v14  ;;  %v2333_v15 = vld [vmem:[%s4050_s13 + $0x40] sm:$0xff] }
 0x455   :  { %v863_v20 = vmax.f32 %v3629_v18, 0.0 }
 0x456   :  { %v3635_v21 = vmax.f32 %v864_v19, 0.0 }
 0x457   :  { %v3639_v22 = vmax.f32 %v863_v20, 0.0 }
 0x458   :  { %v868_v23 = vmax.f32 %v3635_v21, 0.0 }
 0x459   :  { %v867_v24 = vmax.f32 %v3639_v22, 0.0 }
 0x45a   :  { %v870_v25 = vadd.f32 1e-07, %v868_v23 }
 0x45b   :  { %v869_v26 = vadd.f32 1e-07, %v867_v24  ;;  %v1067_v24 = vld [vmem:[%s4054_s17 + $0x40] sm:$0xff] }
 0x45c   :  { %v872_v27 = vsel %vm464_vm1, %v870_v25, -inf }
 0x45d   :  { %v871_v28 = vsel %vm464_vm1, %v869_v26, -inf }
 0x45e   :  { %v873_v29 = vmax.f32 %v871_v28, %v872_v27  ;;  %v1069_v27 = vld [vmem:[%s4054_s17 + $0x50] sm:$0xff]  ;;  %v1070_v28 = vld [vmem:[%s4054_s17 + $0x58] sm:$0xff] }
 0x460   :  { %v874_v30 = vrot.slane %v873_v29, 4 }
 0x462   :  { %v875_v31 = vmax.f32 %v873_v29, %v874_v30  ;;  %v3080_v29 = vpack.c.bf16 %v1070_v28, %v1069_v27  ;;  %v1071_v30 = vld [vmem:[%s4054_s17 + $0x60] sm:$0xff]  ;;  %v2339_v28 = vld [vmem:[%s4050_s13 + $0x70] sm:$0xff] }
 0x464   :  { %v876_v32 = vrot.slane %v875_v31, 2 }
 0x466   :  { %v877_v33 = vmax.f32 %v875_v31, %v876_v32  ;;  %v1072_v31 = vld [vmem:[%s4054_s17 + $0x68] sm:$0xff] }
 0x467   :  { %v3084_v32 = vpack.c.bf16 %v1072_v31, %v1071_v30  ;;  %v2344_v31 = vld [vmem:[%s4054_s17 + $0x80] sm:$0xff] }
 0x468   :  { %v878_v34 = vrot.slane %v877_v33, 1 }
 0x46a   :  { %v879_v35 = vmax.f32 %v877_v33, %v878_v34  ;;  %v1073_v33 = vld [vmem:[%s4054_s17 + $0x70] sm:$0xff]  ;;  %v1074_v34 = vld [vmem:[%s4054_s17 + $0x78] sm:$0xff] }
 0x46c   :  { %v880_v36 = vsub.f32 %v869_v26, %v879_v35  ;;  %v881_v37 = vsub.f32 %v870_v25, %v879_v35  ;;  %v3088_v35 = vpack.c.bf16 %v1074_v34, %v1073_v33 }
 0x46e   :  { %v882_v38 = vmul.f32 1.442695, %v880_v36  ;;  %v884_v39 = vmul.f32 1.442695, %v881_v37  ;;  %v2323_v36 = vld [vmem:[%s4051_s14] ss:$0 sm:$0xff] }
 0x46f   :  { %v2326_v37 = vld [vmem:[%s4052_s15] ss:$0 sm:$0xff] }
 0x470   :  { %3245 = vpow2.f32 %v882_v38 }
 0x471   :  { %3247 = vpow2.f32 %v884_v39 }
 0x47a   :  { %v3246_v40 = vpop.eup %3245 }
 0x47b   :  { %v3248_v41 = vpop.eup %3247  ;;  %v961_v42 = vmul.f32 %v3246_v40, %v869_v26 }
 0x47c   :  { %v3036_v43 = vpack.c.bf16 %v3248_v41, %v3246_v40  ;;  %v962_v48 = vmul.f32 %v3248_v41, %v870_v25  ;;  %v1068_v25 = vld [vmem:[%s4054_s17 + $0x48] sm:$0xff]  ;;  %v2327_v41 = vld [vmem:[%s4053_s16] ss:$0 sm:$0xff] }
 0x47d   :  { %v3076_v26 = vpack.c.bf16 %v1068_v25, %v1067_v24  ;;  %v2337_v25 = vld [vmem:[%s4050_s13 + $0x60] sm:$0xff] }
 0x47e   :  { %3037 = vmatprep.subr.bf16.mxu0 %v3036_v43  ;;  %v3040_v44 = vpack.c.bf16 %v962_v48, %v961_v42 }
 0x47f   :  { %3039 = vmatpush3.bf16.msra.mxu0 %v3036_v43 }
 0x480   :  { %3041 = vmatprep.subr.bf16.mxu0 %v3040_v44 }
 0x482   :  { %2711 = vmatmul.mubr.msk.f32.vlgmr.msra.gmra.mrb[4].mxu0 %vm480_vm15, %v3515_v46 }
 0x483   :  { %3043 = vmatpush3.bf16.msra.mxu0 %v3040_v44  ;;  %2717 = vmatprep.mubr.msk.f32.mxu0 %vm480_vm15, %v3517_v47 }
 0x484   :  { %3045 = vmatprep.subr.bf16.mxu0 %v3044_v50 }
 0x486   :  { %2718 = vmatmul.mubr.msk.f32.vlgmr.msra.gmra.mrb[6].mxu0 %vm480_vm15, %v3515_v46 }
 0x487   :  { %3047 = vmatpush3.bf16.msra.mxu0 %v3044_v50 }
 0x488   :  { %3049 = vmatprep.subr.bf16.mxu0 %v3048_v53 }
 0x48b   :  { %3051 = vmatpush3.bf16.msra.mxu0 %v3048_v53 }
 0x48c   :  { %3053 = vmatprep.subr.bf16.mxu0 %v3052_v56 }
 0x48f   :  { %3055 = vmatpush3.bf16.msra.mxu0 %v3052_v56 }
 0x490   :  { %3057 = vmatprep.subr.bf16.mxu0 %v3056_v59 }
 0x493   :  { %3059 = vmatpush3.bf16.msra.mxu0 %v3056_v59 }
 0x494   :  { %3061 = vmatprep.subr.bf16.mxu0 %v3060_v62 }
 0x555   :  { %v2712_v63 = vpop.f32.mrb[4].mxu0 }
 0x556   :  { %3249 = vrcp.f32 %v2712_v63  ;;  %v952_v0 = vpop.f32.mrb[5].mxu0  ;;  %vm1041_vm0 = vcmp.gt.f32.partialorder %v2712_v63, 0.0 }
 0x557   :  { %3251 = vrcp.f32 %v952_v0  ;;  %vm1040_vm4 = vcmp.gt.f32.partialorder %v952_v0, 0.0 }
 0x559   :  { %v2719_v1 = vpop.f32.mrb[6].mxu0 }
 0x55a   :  { %v1029_v2 = vpop.f32.mrb[7].mxu0 }
 0x560   :  { %v3250_v3 = vpop.eup %3249 }
 0x561   :  { %v3252_v4 = vpop.eup %3251  ;;  %v1043_v5 = vmul.f32 %v3250_v3, %v2719_v1 }
 0x562   :  { %v1042_v6 = vmul.f32 %v3252_v4, %v1029_v2 }
 0x563   :  { %v1045_v7 = vsel %vm1041_vm0, %v1043_v5, 0.0 }
 0x564   :  { %v1044_v10 = vsel %vm1040_vm4, %v1042_v6, 0.0  ;;  %v1047_v12 = vadd.f32 %v1045_v7, %v3635_v21  ;;  %v1065_v21 = vld [vmem:[%s4054_s17 + $0x30] sm:$0xff] }
 0x565   :  { %v1046_v11 = vadd.f32 %v1044_v10, %v3639_v22  ;;  %v1066_v22 = vld [vmem:[%s4054_s17 + $0x38] sm:$0xff] }
 0x566   :  { %v3072_v23 = vpack.c.bf16 %v1066_v22, %v1065_v21  ;;  %v2335_v22 = vld [vmem:[%s4050_s13 + $0x50] sm:$0xff] }
 0x567   :  { %2736 = vmatprep.mubr.msk.f32.mxu0 %vm464_vm1, %v1046_v11 }
 0x568   :  { %2737 = vmatmul.mubr.msk.f32.vlgmr.msra.gmra.mrb[8].mxu0 %vm464_vm1, %v1047_v12 }
 0x569   :  { %3063 = vmatpush3.bf16.msra.mxu0 %v3060_v62 }
 0x56a   :  { %3065 = vmatprep.subr.bf16.mxu0 %v3064_v13 }
 0x56d   :  { %3067 = vmatpush3.bf16.msra.mxu0 %v3064_v13 }
 0x56e   :  { %3069 = vmatprep.subr.bf16.mxu0 %v3068_v17 }
 0x571   :  { %3071 = vmatpush3.bf16.msra.mxu0 %v3068_v17  ;;  %v2334_v17 = vld [vmem:[%s4050_s13 + $0x48] sm:$0xff] }
 0x572   :  { %3073 = vmatprep.subr.bf16.mxu0 %v3072_v23  ;;  %v3100_v21 = vpack.c.bf16 %v2334_v17, %v2333_v15  ;;  %v2366_v17 = vld [vmem:[%s4055_s18 + $0x1] ss:$0 sm:$0xff] }
 0x575   :  { %3075 = vmatpush3.bf16.msra.mxu0 %v3072_v23  ;;  %v2336_v23 = vld [vmem:[%s4050_s13 + $0x58] sm:$0xff] }
 0x576   :  { %3077 = vmatprep.subr.bf16.mxu0 %v3076_v26  ;;  %v3104_v24 = vpack.c.bf16 %v2336_v23, %v2335_v22 }
 0x579   :  { %3079 = vmatpush3.bf16.msra.mxu0 %v3076_v26  ;;  %v2338_v26 = vld [vmem:[%s4050_s13 + $0x68] sm:$0xff] }
 0x57a   :  { %3081 = vmatprep.subr.bf16.mxu0 %v3080_v29  ;;  %v3108_v27 = vpack.c.bf16 %v2338_v26, %v2337_v25 }
 0x57d   :  { %3083 = vmatpush3.bf16.msra.mxu0 %v3080_v29  ;;  %v2340_v29 = vld [vmem:[%s4050_s13 + $0x78] sm:$0xff] }
 0x57e   :  { %3085 = vmatprep.subr.bf16.mxu0 %v3084_v32  ;;  %v3112_v30 = vpack.c.bf16 %v2340_v29, %v2339_v28 }
 0x581   :  { %3087 = vmatpush3.bf16.msra.mxu0 %v3084_v32  ;;  %v2345_v32 = vld [vmem:[%s4054_s17 + $0x88] sm:$0xff] }
 0x582   :  { %3089 = vmatprep.subr.bf16.mxu0 %v3088_v35  ;;  %v3116_v33 = vpack.c.bf16 %v2345_v32, %v2344_v31 }
 0x585   :  { %3091 = vmatpush3.bf16.msra.mxu0 %v3088_v35 }
 0x63b   :  { %v2738_v38 = vpop.f32.mrb[8].mxu0 }
 0x63c   :  { %v1160_v39 = vadd.f32 %v2738_v38, %v2323_v36  ;;  %v1154_v40 = vpop.f32.mrb[9].mxu0 }
 0x63d   :  { %v1155_v42 = vadd.f32 %v2323_v36, %v1154_v40 }
 0x63e   :  { %v1170_v43 = vmul.f32 %v2326_v37, %v1160_v39 }
 0x63f   :  { %v1169_v48 = vmul.f32 %v2326_v37, %v1155_v42 }
 0x640   :  { %v1178_v44 = vadd.f32 %v2327_v41, %v1170_v43  ;;  %v2346_v43 = vld [vmem:[%s4054_s17 + $0x90] sm:$0xff] }
 0x641   :  { %v1177_v45 = vadd.f32 %v2327_v41, %v1169_v48  ;;  %v2347_v48 = vld [vmem:[%s4054_s17 + $0x98] sm:$0xff] }
 0x642   :  { %v1180_v50 = vmax.f32 %v1178_v44, 0.0 }
 0x643   :  { %v1179_v49 = vmax.f32 %v1177_v45, 0.0 }
 0x645   :  { %2771 = vmatprep.mubr.f32.mxu0 %v1179_v49 }
 0x646   :  { %2772 = vmatmul.mubr.f32.vlgmr.msra.gmra.mrb[10].mxu0 %v1180_v50  ;;  %v3120_v50 = vpack.c.bf16 %v2347_v48, %v2346_v43 }
 0x647   :  { %2846 = vmatprep.mubr.msk.f32.mxu0 %vm480_vm15, %v3517_v47 }
 0x719   :  { %v2773_v52 = vpop.f32.mrb[10].mxu0 }
 0x71a   :  { %v1259_v53 = vadd.f32 %v2773_v52, %v2328_v51  ;;  %v1253_v54 = vpop.f32.mrb[11].mxu0  ;;  %v2349_v52 = vld [vmem:[%s4054_s17 + $0xa8] sm:$0xff] }
 0x71b   :  { %v1254_v55 = vadd.f32 %v2328_v51, %v1253_v54  ;;  %v2348_v51 = vld [vmem:[%s4054_s17 + $0xa0] sm:$0xff]  ;;  %v2350_v54 = vld [vmem:[%s4054_s17 + $0xb0] sm:$0xff] }
 0x71c   :  { %v3743_v56 = vadd.f32 %v1259_v53, %v864_v19  ;;  %v3124_v53 = vpack.c.bf16 %v2349_v52, %v2348_v51  ;;  %v2371_v52 = vld [vmem:[%s4050_s13 + $0x80] sm:$0xff] }
 0x71d   :  { %v3747_v57 = vadd.f32 %v1254_v55, %v863_v20  ;;  %v2351_v55 = vld [vmem:[%s4054_s17 + $0xb8] sm:$0xff] }
 0x71e   :  { %v1265_v58 = vmax.f32 %v3743_v56, 0.0 }
 0x71f   :  { %v1264_v59 = vmax.f32 %v3747_v57, 0.0 }
 0x720   :  { %v1267_v60 = vmax.f32 %v1265_v58, 0.0 }
 0x721   :  { %v1266_v61 = vmax.f32 %v1264_v59, 0.0 }
 0x722   :  { %v1269_v62 = vadd.f32 1e-07, %v1267_v60  ;;  %v2353_v60 = vld [vmem:[%s4054_s17 + $0xc8] sm:$0xff] }
 0x723   :  { %v1268_v63 = vadd.f32 1e-07, %v1266_v61 }
 0x724   :  { %v1271_v16 = vsel %vm464_vm1, %v1269_v62, -inf }
 0x725   :  { %v1270_v19 = vsel %vm464_vm1, %v1268_v63, -inf }
 0x726   :  { %v1272_v0 = vmax.f32 %v1270_v19, %v1271_v16  ;;  %v2356_v19 = vld [vmem:[%s4054_s17 + $0xe0] sm:$0xff] }
 0x728   :  { %v1273_v18 = vrot.slane %v1272_v0, 4 }
 0x72a   :  { %v1274_v20 = vmax.f32 %v1272_v0, %v1273_v18  ;;  %v2357_v0 = vld [vmem:[%s4054_s17 + $0xe8] sm:$0xff] }
 0x72b   :  { %v3140_v18 = vpack.c.bf16 %v2357_v0, %v2356_v19  ;;  %v2383_v19 = vld [vmem:[%s4054_s17 + $0x108] sm:$0xff] }
 0x72c   :  { %v1275_v1 = vrot.slane %v1274_v20, 2 }
 0x72e   :  { %v1276_v2 = vmax.f32 %v1274_v20, %v1275_v1  ;;  %v2358_v20 = vld [vmem:[%s4054_s17 + $0xf0] sm:$0xff]  ;;  %v2359_v1 = vld [vmem:[%s4054_s17 + $0xf8] sm:$0xff] }
 0x730   :  { %v1277_v3 = vrot.slane %v1276_v2, 1 }
 0x732   :  { %v1278_v4 = vmax.f32 %v1276_v2, %v1277_v3  ;;  %v3144_v2 = vpack.c.bf16 %v2359_v1, %v2358_v20  ;;  %v2361_v3 = vld [vmem:[%s4051_s14 + $0x1] ss:$0 sm:$0xff] }
 0x734   :  { %v1279_v5 = vsub.f32 %v1268_v63, %v1278_v4  ;;  %v1280_v6 = vsub.f32 %v1269_v62, %v1278_v4  ;;  %v2364_v4 = vld [vmem:[%s4052_s15 + $0x1] ss:$0 sm:$0xff] }
 0x736   :  { %v1281_v7 = vmul.f32 1.442695, %v1279_v5  ;;  %v1283_v8 = vmul.f32 1.442695, %v1280_v6 }
 0x738   :  { %3253 = vpow2.f32 %v1281_v7 }
 0x739   :  { %3255 = vpow2.f32 %v1283_v8  ;;  %v2365_v8 = vld [vmem:[%s4053_s16 + $0x1] ss:$0 sm:$0xff] }
 0x742   :  { %v3254_v9 = vpop.eup %3253 }
 0x743   :  { %v3256_v10 = vpop.eup %3255  ;;  %v1360_v11 = vmul.f32 %v3254_v9, %v1268_v63  ;;  %v2355_v63 = vld [vmem:[%s4054_s17 + $0xd8] sm:$0xff] }
 0x744   :  { %v3092_v12 = vpack.c.bf16 %v3256_v10, %v3254_v9  ;;  %v1361_v13 = vmul.f32 %v3256_v10, %v1269_v62  ;;  %v2354_v62 = vld [vmem:[%s4054_s17 + $0xd0] sm:$0xff] }
 0x745   :  { %v3136_v16 = vpack.c.bf16 %v2355_v63, %v2354_v62  ;;  %v2378_v62 = vld [vmem:[%s4050_s13 + $0xb8] sm:$0xff] }
 0x746   :  { %3093 = vmatprep.subr.bf16.mxu1 %v3092_v12  ;;  %v3096_v14 = vpack.c.bf16 %v1361_v13, %v1360_v11 }
 0x747   :  { %3095 = vmatpush3.bf16.msra.mxu1 %v3092_v12 }
 0x748   :  { %3097 = vmatprep.subr.bf16.mxu1 %v3096_v14 }
 0x74a   :  { %2779 = vmatmul.mubr.msk.f32.vlgmr.msra.gmra.mrb[10].mxu1 %vm480_vm15, %v3515_v46 }
 0x74b   :  { %3099 = vmatpush3.bf16.msra.mxu1 %v3096_v14  ;;  %2785 = vmatprep.mubr.msk.f32.mxu1 %vm480_vm15, %v3517_v47 }
 0x74c   :  { %3101 = vmatprep.subr.bf16.mxu1 %v3100_v21 }
 0x74e   :  { %2786 = vmatmul.mubr.msk.f32.vlgmr.msra.gmra.mrb[12].mxu1 %vm480_vm15, %v3515_v46 }
 0x74f   :  { %3103 = vmatpush3.bf16.msra.mxu1 %v3100_v21 }
 0x750   :  { %3105 = vmatprep.subr.bf16.mxu1 %v3104_v24 }
 0x753   :  { %3107 = vmatpush3.bf16.msra.mxu1 %v3104_v24 }
 0x754   :  { %3109 = vmatprep.subr.bf16.mxu1 %v3108_v27 }
 0x757   :  { %3111 = vmatpush3.bf16.msra.mxu1 %v3108_v27 }
 0x758   :  { %3113 = vmatprep.subr.bf16.mxu1 %v3112_v30 }
 0x75b   :  { %3115 = vmatpush3.bf16.msra.mxu1 %v3112_v30 }
 0x75c   :  { %3117 = vmatprep.subr.bf16.mxu1 %v3116_v33 }
 0x81d   :  { %v2780_v34 = vpop.f32.mrb[10].mxu1 }
 0x81e   :  { %3257 = vrcp.f32 %v2780_v34  ;;  %v1351_v35 = vpop.f32.mrb[11].mxu1  ;;  %vm1440_vm5 = vcmp.gt.f32.partialorder %v2780_v34, 0.0 }
 0x81f   :  { %3259 = vrcp.f32 %v1351_v35  ;;  %vm1439_vm6 = vcmp.gt.f32.partialorder %v1351_v35, 0.0 }
 0x821   :  { %v2787_v36 = vpop.f32.mrb[12].mxu1 }
 0x822   :  { %v1428_v37 = vpop.f32.mrb[13].mxu1 }
 0x828   :  { %v3258_v38 = vpop.eup %3257 }
 0x829   :  { %v3260_v39 = vpop.eup %3259  ;;  %v1442_v40 = vmul.f32 %v3258_v38, %v2787_v36 }
 0x82a   :  { %v1441_v41 = vmul.f32 %v3260_v39, %v1428_v37 }
 0x82b   :  { %v1444_v42 = vsel %vm1440_vm5, %v1442_v40, 0.0 }
 0x82c   :  { %v1443_v44 = vsel %vm1439_vm6, %v1441_v41, 0.0  ;;  %v1446_v49 = vadd.f32 %v1444_v42, %v1265_v58  ;;  %v3128_v58 = vpack.c.bf16 %v2351_v55, %v2350_v54  ;;  %v2373_v55 = vld [vmem:[%s4050_s13 + $0x90] sm:$0xff] }
 0x82d   :  { %v1445_v45 = vadd.f32 %v1443_v44, %v1264_v59  ;;  %v2352_v59 = vld [vmem:[%s4054_s17 + $0xc0] sm:$0xff] }
 0x82e   :  { %v3132_v61 = vpack.c.bf16 %v2353_v60, %v2352_v59  ;;  %v2376_v59 = vld [vmem:[%s4050_s13 + $0xa8] sm:$0xff] }
 0x82f   :  { %2804 = vmatprep.mubr.msk.f32.mxu1 %vm464_vm1, %v1445_v45 }
 0x830   :  { %2805 = vmatmul.mubr.msk.f32.vlgmr.msra.gmra.mrb[14].mxu1 %vm464_vm1, %v1446_v49 }
 0x831   :  { %3119 = vmatpush3.bf16.msra.mxu1 %v3116_v33 }
 0x832   :  { %3121 = vmatprep.subr.bf16.mxu1 %v3120_v50 }
 0x835   :  { %3123 = vmatpush3.bf16.msra.mxu1 %v3120_v50 }
 0x836   :  { %3125 = vmatprep.subr.bf16.mxu1 %v3124_v53 }
 0x839   :  { %3127 = vmatpush3.bf16.msra.mxu1 %v3124_v53  ;;  %v2372_v53 = vld [vmem:[%s4050_s13 + $0x88] sm:$0xff] }
 0x83a   :  { %3129 = vmatprep.subr.bf16.mxu1 %v3128_v58  ;;  %v3156_v54 = vpack.c.bf16 %v2372_v53, %v2371_v52  ;;  %v2084_v52 = vld [vmem:[%s4056_s19 + $0x8] sm:$0xff] }
 0x83d   :  { %3131 = vmatpush3.bf16.msra.mxu1 %v3128_v58  ;;  %v2375_v58 = vld [vmem:[%s4050_s13 + $0xa0] sm:$0xff] }
 0x83e   :  { %3133 = vmatprep.subr.bf16.mxu1 %v3132_v61  ;;  %v3164_v60 = vpack.c.bf16 %v2376_v59, %v2375_v58  ;;  %v2087_v58 = vld [vmem:[%s4056_s19 + $0x20] sm:$0xff]  ;;  %v2088_v59 = vld [vmem:[%s4056_s19 + $0x28] sm:$0xff] }
 0x841   :  { %3135 = vmatpush3.bf16.msra.mxu1 %v3132_v61  ;;  %v2377_v61 = vld [vmem:[%s4050_s13 + $0xb0] sm:$0xff] }
 0x842   :  { %3137 = vmatprep.subr.bf16.mxu1 %v3136_v16  ;;  %v3168_v63 = vpack.c.bf16 %v2378_v62, %v2377_v61  ;;  %v2089_v61 = vld [vmem:[%s4056_s19 + $0x30] sm:$0xff]  ;;  %v2090_v62 = vld [vmem:[%s4056_s19 + $0x38] sm:$0xff] }
 0x845   :  { %3139 = vmatpush3.bf16.msra.mxu1 %v3136_v16  ;;  %v2382_v16 = vld [vmem:[%s4054_s17 + $0x100] sm:$0xff] }
 0x846   :  { %3141 = vmatprep.subr.bf16.mxu1 %v3140_v18  ;;  %v3172_v0 = vpack.c.bf16 %v2383_v19, %v2382_v16  ;;  %v3298_v16 = vmov 0.0   ;;  %v2404_v19 = vld [vmem:[%s4055_s18 + $0x2] ss:$0 sm:$0xff] }
 0x849   :  { %3143 = vmatpush3.bf16.msra.mxu1 %v3140_v18 }
 0x84a   :  { %3145 = vmatprep.subr.bf16.mxu1 %v3144_v2 }
 0x84d   :  { %3147 = vmatpush3.bf16.msra.mxu1 %v3144_v2 }
 0x903   :  { %v2806_v5 = vpop.f32.mrb[14].mxu1 }
 0x904   :  { %v1565_v6 = vadd.f32 %v2806_v5, %v2361_v3  ;;  %v1559_v7 = vpop.f32.mrb[15].mxu1 }
 0x905   :  { %v1560_v9 = vadd.f32 %v2361_v3, %v1559_v7 }
 0x906   :  { %v1575_v10 = vmul.f32 %v2364_v4, %v1565_v6 }
 0x907   :  { %v1574_v11 = vmul.f32 %v2364_v4, %v1560_v9  ;;  %v2385_v9 = vld [vmem:[%s4054_s17 + $0x118] sm:$0xff] }
 0x908   :  { %v1583_v12 = vadd.f32 %v2365_v8, %v1575_v10 }
 0x909   :  { %v1582_v13 = vadd.f32 %v2365_v8, %v1574_v11  ;;  %v2384_v8 = vld [vmem:[%s4054_s17 + $0x110] sm:$0xff] }
 0x90a   :  { %v1585_v15 = vmax.f32 %v1583_v12, 0.0 }
 0x90b   :  { %v1584_v14 = vmax.f32 %v1582_v13, 0.0  ;;  %v3176_v13 = vpack.c.bf16 %v2385_v9, %v2384_v8 }
 0x90d   :  { %2839 = vmatprep.mubr.f32.mxu1 %v1584_v14  ;;  %v2386_v14 = vld [vmem:[%s4054_s17 + $0x120] sm:$0xff] }
 0x90e   :  { %2840 = vmatmul.mubr.f32.vlgmr.msra.gmra.mrb[16].mxu1 %v1585_v15  ;;  %v2387_v15 = vld [vmem:[%s4054_s17 + $0x128] sm:$0xff] }
 0x90f   :  { %2926 = vmatprep.mubr.msk.f32.mxu1 %vm3297_vm9, %v3298_v16 }
 0x9e1   :  { %v2841_v21 = vpop.f32.mrb[16].mxu1 }
 0x9e2   :  { %v1664_v22 = vadd.f32 %v2841_v21, %v2366_v17  ;;  %v1658_v23 = vpop.f32.mrb[17].mxu1  ;;  %v2388_v21 = vld [vmem:[%s4054_s17 + $0x130] sm:$0xff] }
 0x9e3   :  { %v1659_v24 = vadd.f32 %v2366_v17, %v1658_v23  ;;  %v3180_v17 = vpack.c.bf16 %v2387_v15, %v2386_v14  ;;  %v2168_v14 = vld [vmem:[%s4058_s21 + $0x10] sm:$0xff]  ;;  %v2169_v15 = vld [vmem:[%s4058_s21 + $0x18] sm:$0xff] }
 0x9e4   :  { %v3854_v25 = vadd.f32 %v1664_v22, %v3743_v56  ;;  %v2389_v22 = vld [vmem:[%s4054_s17 + $0x138] sm:$0xff] }
 0x9e5   :  { %v3857_v26 = vadd.f32 %v1659_v24, %v3747_v57  ;;  %v3184_v23 = vpack.c.bf16 %v2389_v22, %v2388_v21  ;;  %v2390_v24 = vld [vmem:[%s4054_s17 + $0x140] sm:$0xff]  ;;  %v2171_v22 = vld [vmem:[%s4058_s21 + $0x28] sm:$0xff] }
 0x9e6   :  { %v1670_v27 = vmax.f32 %v3854_v25, 0.0  ;;  %v2170_v21 = vld [vmem:[%s4058_s21 + $0x20] sm:$0xff] }
 0x9e7   :  { %v1669_v28 = vmax.f32 %v3857_v26, 0.0 }
 0x9e8   :  { %v1672_v29 = vmax.f32 %v1670_v27, 0.0 }
 0x9e9   :  { %v1671_v30 = vmax.f32 %v1669_v28, 0.0 }
 0x9ea   :  { %v1674_v31 = vadd.f32 1e-07, %v1672_v29  ;;  %v2392_v29 = vld [vmem:[%s4054_s17 + $0x150] sm:$0xff] }
 0x9eb   :  { %v1673_v32 = vadd.f32 1e-07, %v1671_v30  ;;  %v2393_v30 = vld [vmem:[%s4054_s17 + $0x158] sm:$0xff] }
 0x9ec   :  { %v1676_v33 = vsel %vm464_vm1, %v1674_v31, -inf }
 0x9ed   :  { %v1675_v56 = vsel %vm464_vm1, %v1673_v32, -inf }
 0x9ee   :  { %v1677_v34 = vmax.f32 %v1675_v56, %v1676_v33  ;;  %v2395_v33 = vld [vmem:[%s4054_s17 + $0x168] sm:$0xff] }
 0x9f0   :  { %v1678_v35 = vrot.slane %v1677_v34, 4 }
 0x9f2   :  { %v1679_v57 = vmax.f32 %v1677_v34, %v1678_v35  ;;  %v2396_v34 = vld [vmem:[%s4054_s17 + $0x170] sm:$0xff]  ;;  %v2397_v35 = vld [vmem:[%s4054_s17 + $0x178] sm:$0xff] }
 0x9f4   :  { %v1680_v36 = vrot.slane %v1679_v57, 2 }
 0x9f6   :  { %v1681_v37 = vmax.f32 %v1679_v57, %v1680_v36  ;;  %v3200_v57 = vpack.c.bf16 %v2397_v35, %v2396_v34  ;;  %v2399_v36 = vld [vmem:[%s4051_s14 + $0x2] ss:$0 sm:$0xff] }
 0x9f8   :  { %v1682_v38 = vrot.slane %v1681_v37, 1 }
 0x9fa   :  { %v1683_v39 = vmax.f32 %v1681_v37, %v1682_v38  ;;  %v2402_v37 = vld [vmem:[%s4052_s15 + $0x2] ss:$0 sm:$0xff] }
 0x9fc   :  { %v1684_v40 = vsub.f32 %v1673_v32, %v1683_v39  ;;  %v1685_v41 = vsub.f32 %v1674_v31, %v1683_v39 }
 0x9fe   :  { %v1686_v42 = vmul.f32 1.442695, %v1684_v40  ;;  %v1688_v43 = vmul.f32 1.442695, %v1685_v41  ;;  %v2403_v41 = vld [vmem:[%s4053_s16 + $0x2] ss:$0 sm:$0xff] }
 0xa00   :  { %3261 = vpow2.f32 %v1686_v42 }
 0xa01   :  { %3263 = vpow2.f32 %v1688_v43 }
 0xa0a   :  { %v3262_v48 = vpop.eup %3261 }
 0xa0b   :  { %v3264_v44 = vpop.eup %3263  ;;  %v1765_v45 = vmul.f32 %v3262_v48, %v1673_v32  ;;  %v2394_v32 = vld [vmem:[%s4054_s17 + $0x160] sm:$0xff] }
 0xa0c   :  { %v3148_v49 = vpack.c.bf16 %v3264_v44, %v3262_v48  ;;  %v1766_v50 = vmul.f32 %v3264_v44, %v1674_v31  ;;  %v3192_v31 = vpack.c.bf16 %v2393_v30, %v2392_v29  ;;  %v3196_v56 = vpack.c.bf16 %v2395_v33, %v2394_v32  ;;  %v2091_v29 = vld [vmem:[%s4057_s20] sm:$0x1] }
 0xa0e   :  { %3149 = vmatprep.subr.bf16.mxu0 %v3148_v49  ;;  %v3152_v51 = vpack.c.bf16 %v1766_v50, %v1765_v45 }
 0xa0f   :  { %3151 = vmatpush3.bf16.msra.mxu0 %v3148_v49 }
 0xa10   :  { %3153 = vmatprep.subr.bf16.mxu0 %v3152_v51 }
 0xa12   :  { %2847 = vmatmul.mubr.msk.f32.vlgmr.msra.gmra.mrb[12].mxu0 %vm480_vm15, %v3515_v46 }
 0xa13   :  { %3155 = vmatpush3.bf16.msra.mxu0 %v3152_v51  ;;  %2853 = vmatprep.mubr.msk.f32.mxu0 %vm480_vm15, %v3517_v47  ;;  %v2374_v47 = vld [vmem:[%s4050_s13 + $0x98] sm:$0xff]  ;;  %v2083_v51 = vld [vmem:[%s4056_s19] sm:$0xff]  ;;  %s2256_s13 = sshll.u32 %s3299_s6, 4  ;;  %s2257_s13 = int_to_ptr.vmem [resolvable:$true] %s2256_s13 }
 0xa14   :  { %3157 = vmatprep.subr.bf16.mxu0 %v3156_v54  ;;  %v3205_v53 = vpack.c.bf16 %v2084_v52, %v2083_v51  ;;  %s3273_s20 = scalar_lea.vmem %s2257_s13, 32  ;;  %p3274_p1 = scmp.lt.s32.totalorder %s2257_s13, %s2257_s13 }
 0xa16   :  { %2854 = vmatmul.mubr.msk.f32.vlgmr.msra.gmra.mrb[14].mxu0 %vm480_vm15, %v3515_v46  ;;  %v3160_v46 = vpack.c.bf16 %v2374_v47, %v2373_v55  ;;  %v2085_v55 = vld [vmem:[%s4056_s19 + $0x10] sm:$0xff]  ;;  %v2086_v47 = vld [vmem:[%s4056_s19 + $0x18] sm:$0xff] }
 0xa17   :  { %3159 = vmatpush3.bf16.msra.mxu0 %v3156_v54  ;;  %v3296_v54 = vmov 0.0|0.0  }
 0xa18   :  { %3161 = vmatprep.subr.bf16.mxu0 %v3160_v46  ;;  %3204 = vmatprep.subr.bf16.mxu1 %v3296_v54 }
 0xa19   :  { %3206 = vmatpush3.bf16.msra.mxu1 %v3205_v53 }
 0xa1a   :  { %3207 = vmatprep.subr.bf16.mxu1 %v3296_v54 }
 0xa1b   :  { %3163 = vmatpush3.bf16.msra.mxu0 %v3160_v46  ;;  %v3208_v46 = vpack.c.bf16 %v2086_v47, %v2085_v55 }
 0xa1c   :  { %3165 = vmatprep.subr.bf16.mxu0 %v3164_v60 }
 0xa1d   :  { %3209 = vmatpush3.bf16.msra.mxu1 %v3208_v46 }
 0xa1e   :  { %3210 = vmatprep.subr.bf16.mxu1 %v3296_v54 }
 0xa1f   :  { %3167 = vmatpush3.bf16.msra.mxu0 %v3164_v60  ;;  %v3211_v60 = vpack.c.bf16 %v2088_v59, %v2087_v58 }
 0xa20   :  { %3169 = vmatprep.subr.bf16.mxu0 %v3168_v63 }
 0xa21   :  { %3212 = vmatpush3.bf16.msra.mxu1 %v3211_v60 }
 0xa22   :  { %3213 = vmatprep.subr.bf16.mxu1 %v3296_v54 }
 0xa23   :  { %3171 = vmatpush3.bf16.msra.mxu0 %v3168_v63  ;;  %v3214_v63 = vpack.c.bf16 %v2090_v62, %v2089_v61 }
 0xa24   :  { %3173 = vmatprep.subr.bf16.mxu0 %v3172_v0 }
 0xa25   :  { %3215 = vmatpush3.bf16.msra.mxu1 %v3214_v63 }
 0xa26   :  { %3216 = vmatprep.subr.bf16.mxu1 %v3296_v54 }
 0xae5   :  { %v2848_v18 = vpop.f32.mrb[12].mxu0 }
 0xae6   :  { %3265 = vrcp.f32 %v2848_v18  ;;  %v1756_v20 = vpop.f32.mrb[13].mxu0  ;;  %vm1845_vm7 = vcmp.gt.f32.partialorder %v2848_v18, 0.0 }
 0xae7   :  { %3267 = vrcp.f32 %v1756_v20  ;;  %vm1844_vm8 = vcmp.gt.f32.partialorder %v1756_v20, 0.0 }
 0xae9   :  { %v2855_v1 = vpop.f32.mrb[14].mxu0 }
 0xaea   :  { %v1833_v2 = vpop.f32.mrb[15].mxu0 }
 0xaf0   :  { %v3266_v3 = vpop.eup %3265 }
 0xaf1   :  { %v3268_v4 = vpop.eup %3267  ;;  %v1847_v5 = vmul.f32 %v3266_v3, %v2855_v1 }
 0xaf2   :  { %v1846_v6 = vmul.f32 %v3268_v4, %v1833_v2 }
 0xaf3   :  { %v1849_v7 = vsel %vm1845_vm7, %v1847_v5, 0.0 }
 0xaf4   :  { %v1848_v10 = vsel %vm1844_vm8, %v1846_v6, 0.0  ;;  %v1851_v12 = vadd.f32 %v1849_v7, %v1670_v27  ;;  %v2391_v27 = vld [vmem:[%s4054_s17 + $0x148] sm:$0xff] }
 0xaf5   :  { %v1850_v11 = vadd.f32 %v1848_v10, %v1669_v28  ;;  %v3188_v28 = vpack.c.bf16 %v2391_v27, %v2390_v24  ;;  %v2172_v24 = vld [vmem:[%s4058_s21 + $0x30] sm:$0xff]  ;;  %v2173_v27 = vld [vmem:[%s4058_s21 + $0x38] sm:$0xff] }
 0xaf7   :  { %2872 = vmatprep.mubr.msk.f32.mxu0 %vm464_vm1, %v1850_v11  ;;  %v2166_v11 = vld [vmem:[%s4058_s21] sm:$0xff] }
 0xaf8   :  { %2873 = vmatmul.mubr.msk.f32.vlgmr.msra.gmra.mrb[16].mxu0 %vm464_vm1, %v1851_v12  ;;  %v2167_v12 = vld [vmem:[%s4058_s21 + $0x8] sm:$0xff]  ;;  %s3269_s21 = scalar_lea.vmem %s2257_s13, 16 }
 0xaf9   :  { %3175 = vmatpush3.bf16.msra.mxu0 %v3172_v0  ;;  %p3270_p0 = scmp.ne.s32.totalorder %s2257_s13, %s3269_s21  ;;  %p3275_p2 = scmp.lt.s32.totalorder %s3273_s20, %s3269_s21 }
 0xafa   :  { %3177 = vmatprep.subr.bf16.mxu0 %v3176_v13 }
 0xafb   :  { %p3276_p3 = por %p3275_p2, %p3274_p1 }
 0xafd   :  { %3179 = vmatpush3.bf16.msra.mxu0 %v3176_v13  ;;  %v3217_v13 = vpack.c.bf16 %v2167_v12, %v2166_v11  ;;  %p3277_p4 = pnand %p3276_p3, %p3270_p0 }
 0xafe   :  { %3181 = vmatprep.subr.bf16.mxu0 %v3180_v17 }
 0xb01   :  { %3183 = vmatpush3.bf16.msra.mxu0 %v3180_v17  ;;  %v3220_v17 = vpack.c.bf16 %v2169_v15, %v2168_v14 }
 0xb02   :  { %3185 = vmatprep.subr.bf16.mxu0 %v3184_v23 }
 0xb05   :  { %3187 = vmatpush3.bf16.msra.mxu0 %v3184_v23  ;;  %v3223_v23 = vpack.c.bf16 %v2171_v22, %v2170_v21 }
 0xb06   :  { %3189 = vmatprep.subr.bf16.mxu0 %v3188_v28 }
 0xb09   :  { %3191 = vmatpush3.bf16.msra.mxu0 %v3188_v28  ;;  %v3226_v28 = vpack.c.bf16 %v2173_v27, %v2172_v24 }
 0xb0a   :  { %3193 = vmatprep.subr.bf16.mxu0 %v3192_v31 }
 0xb0d   :  { %3195 = vmatpush3.bf16.msra.mxu0 %v3192_v31 }
 0xb0e   :  { %3197 = vmatprep.subr.bf16.mxu0 %v3196_v56 }
 0xb11   :  { %3199 = vmatpush3.bf16.msra.mxu0 %v3196_v56  ;;  %v2174_v56 = vld [vmem:[%s4059_s22] sm:$0x1] }
 0xb12   :  { %3201 = vmatprep.subr.bf16.mxu0 %v3200_v57 }
 0xb15   :  { %3203 = vmatpush3.bf16.msra.mxu0 %v3200_v57 }
 0xbcb   :  { %v2874_v38 = vpop.f32.mrb[16].mxu0 }
 0xbcc   :  { %v1970_v39 = vadd.f32 %v2874_v38, %v2399_v36  ;;  %v1964_v40 = vpop.f32.mrb[17].mxu0 }
 0xbcd   :  { %v1965_v42 = vadd.f32 %v2399_v36, %v1964_v40 }
 0xbce   :  { %v1980_v43 = vmul.f32 %v2402_v37, %v1970_v39 }
 0xbcf   :  { %v1979_v48 = vmul.f32 %v2402_v37, %v1965_v42 }
 0xbd0   :  { %v1988_v44 = vadd.f32 %v2403_v41, %v1980_v43 }
 0xbd1   :  { %v1987_v45 = vadd.f32 %v2403_v41, %v1979_v48 }
 0xbd2   :  { %v1990_v50 = vmax.f32 %v1988_v44, 0.0 }
 0xbd3   :  { %v1989_v49 = vmax.f32 %v1987_v45, 0.0 }
 0xbd5   :  { %2907 = vmatprep.mubr.f32.mxu0 %v1989_v49 }
 0xbd6   :  { %2908 = vmatmul.mubr.f32.vlgmr.msra.gmra.mrb[18].mxu0 %v1990_v50 }
 0xca9   :  { %v2909_v0 = vpop.f32.mrb[18].mxu0 }
 0xcaa   :  { %v2069_v18 = vadd.f32 %v2909_v0, %v2404_v19  ;;  %v2063_v20 = vpop.f32.mrb[19].mxu0 }
 0xcab   :  { %v2064_v1 = vadd.f32 %v2404_v19, %v2063_v20 }
 0xcac   :  { %v2073_v2 = vadd.f32 %v2069_v18, %v3854_v25 }
 0xcad   :  { %v2072_v3 = vadd.f32 %v2064_v1, %v3857_v26 }
 0xcae   :  { %v2075_v4 = vsel %vm464_vm1, %v2073_v2, -inf }
 0xcaf   :  { %v2074_v5 = vsel %vm464_vm1, %v2072_v3, -inf }
 0xcb0   :  { %v2076_v6 = vmax.f32 %v2074_v5, %v2075_v4 }
 0xcb2   :  { %v2077_v7 = vrot.slane %v2076_v6, 4 }
 0xcb4   :  { %v2078_v8 = vmax.f32 %v2076_v6, %v2077_v7 }
 0xcb6   :  { %v2079_v9 = vrot.slane %v2078_v8, 2 }
 0xcb8   :  { %v2080_v10 = vmax.f32 %v2078_v8, %v2079_v9 }
 0xcba   :  { %v2081_v25 = vrot.slane %v2080_v10, 1 }
 0xcbc   :  { %v2082_v26 = vmax.f32 %v2080_v10, %v2081_v25 }
 0xcbe   :  { %2927 = vmatmul.mubr.msk.f32.vlgmr.msra.gmra.mrb[18].mxu1 %vm464_vm1, %v2082_v26 }
 0xcbf   :  { %3218 = vmatpush3.bf16.msra.mxu1 %v3217_v13  ;;  %2945 = vmatprep.mubr.msk.f32.mxu1 %vm3297_vm9, %v3298_v16 }
 0xcc0   :  { %3219 = vmatprep.subr.bf16.mxu1 %v3296_v54 }
 0xcc3   :  { %3221 = vmatpush3.bf16.msra.mxu1 %v3220_v17 }
 0xcc4   :  { %3222 = vmatprep.subr.bf16.mxu1 %v3296_v54 }
 0xcc7   :  { %3224 = vmatpush3.bf16.msra.mxu1 %v3223_v23 }
 0xcc8   :  { %3225 = vmatprep.subr.bf16.mxu1 %v3296_v54 }
 0xccb   :  { %3227 = vmatpush3.bf16.msra.mxu1 %v3226_v28 }
 0xd91   :  { %v2161_v30 = vpop.f32.mrb[18].mxu1 }
 0xd92   :  { %v2162_v31 = vadd.f32 %v2161_v30, %v2091_v29  ;;  %v2928_v32 = vpop.f32.mrb[19].mxu1 }
 0xd94   :  { %v2165_v33 = vmax.f32 %v2162_v31, 0.0 }
 0xd96   :  { %2946 = vmatmul.mubr.msk.f32.vlgmr.msra.gmra.mrb[20].mxu1 %vm464_vm1, %v2165_v33 }
 0xe69   :  { %v2244_v34 = vpop.f32.mrb[20].mxu1 }
 0xe6a   :  { %v2245_v35 = vadd.f32 %v2244_v34, %v2174_v56  ;;  %v2947_v57 = vpop.f32.mrb[21].mxu1 }
 0xe6c   :  { %2249 = vst.msk [vmem:[#allocation2] sm:$0x1] %vm2248_vm10, %v2245_v35 }
 0xe6d   :  { %3280 = shalt.err (!%p3277_p4)
}
 0xe6e   :  { %s3281_s22 = scalar_lea.hbm %s4060_s23, 16 }
 0xe6f   :  { %p3282_p5 = scmp.ne.s32.totalorder %s4060_s23, %s3281_s22  ;;  %p3285_p6 = scmp.lt.u32.totalorder %s3281_s22, %s4060_s23 }
 0xe71   :  { %p3287_p7 = pnand %p3285_p6, %p3282_p5 }
 0xe73   :  { %3290 = shalt.err (!%p3287_p7)
}
 0xe74   :  { %2259 = dma.vmem_to_hbm [thread:$0]  %s2257_s13, 16, %s4060_s23, [#allocation3]  }
 0xe75   :  { %3291 = dma.done.wait [#allocation3], 16  }
 0xe76   :  { %3292 = vsyncadd [#allocation3], 4294967280 }
 0xe77   :  { %2263 = vsyncpa [#allocation3], 1 }

</bundles_post_ra>
